<compile_context>
chip_gen: v7x
topology: tpu7x:2x2x1
jax: 0.10.0
libtpu: 0.0.40
codegen_flags: <defaults>
</compile_context>

<pallas_src>
import jax
import jax.numpy as jnp
import numpy as np
from jax.experimental import pallas as pl
from jax.experimental.pallas import tpu as pltpu

# ------------- model hyper-parameters (small, consistent with the module) -----
N_CHARACTERS = 64            # len(good_characters[:64])
INPUT_SIZE = 64              # embedding dim / GRU layer-0 input
HIDDEN_SIZE = 128            # GRU hidden size (kept small; multiple of 128)
OUTPUT_SIZE = N_CHARACTERS   # linear output (vocab)
N_LAYERS = 5
D_PAD = max(INPUT_SIZE, HIDDEN_SIZE)   # padded input width for layer 0 (=128)
O_PAD = 128                  # lane-padded decoder width (OUTPUT_SIZE=64 -> 128)


# ------------------------------ Pallas kernel --------------------------------
def rnn_seq_kernel(chars_ref,            # SMEM (T,)  int32    scalar-prefetch
                   emb_ref,              # VMEM (64, D_PAD)    f32   (resident)
                   h0_ref,               # VMEM (L, H)         f32   (resident)
                   w_ref,                # VMEM (L, D_PAD+H, 4H) bf16 (resident)
                   b_ref,                # VMEM (L, 4H)        f32   (resident)
                   wlin_ref,             # VMEM (H, O_PAD)     bf16  (resident)
                   blin_ref,             # VMEM (1, O_PAD)     f32   (resident)
                   out_ref,              # VMEM (T, O_PAD)     f32   (resident out)
                   hout_ref,             # VMEM (L, H)         f32   (resident out)
                   h_scr):               # VMEM (L, H)         f32   scratch
    H = HIDDEN_SIZE
    t = pl.program_id(0)

    @pl.when(t == 0)
    def _load_initial_hidden():
        h_scr[...] = h0_ref[...]

    # In-kernel embedding lookup from the resident table.
    c = chars_ref[t]
    x = emb_ref[pl.ds(c, 1), :]                               # (1, D_PAD) f32

    for l in range(N_LAYERS):                                 # static unroll (L small)
        h_prev = h_scr[pl.ds(l, 1), :]                        # (1, H) f32
        xh = jnp.concatenate([x, h_prev], axis=-1).astype(jnp.bfloat16)  # (1, D_PAD+H)
        # One fused MXU push per layer: columns = [r | z | n_x | n_h].
        g = jnp.dot(xh, w_ref[l], preferred_element_type=jnp.float32)    # (1, 4H) f32
        g = g + b_ref[pl.ds(l, 1), :]
        r = jax.nn.sigmoid(g[:, 0 * H:1 * H])
        z = jax.nn.sigmoid(g[:, 1 * H:2 * H])
        n = jnp.tanh(g[:, 2 * H:3 * H] + r * g[:, 3 * H:4 * H])
        h_new = (1.0 - z) * n + z * h_prev
        h_scr[pl.ds(l, 1), :] = h_new
        x = h_new                                             # D_PAD == H, no re-pad

    logits = jnp.dot(x.astype(jnp.bfloat16), wlin_ref[...],
                     preferred_element_type=jnp.float32) + blin_ref[...]
    out_ref[pl.ds(t, 1), :] = jnp.maximum(logits, 0.0)        # ReLU, lane-dense row

    @pl.when(t == pl.num_programs(0) - 1)
    def _store_final_hidden():
        hout_ref[...] = h_scr[...]


# ------------------------------ wrapper ---------------------------------------
@jax.jit
def rnn_forward_seq(chars, hidden, emb_pad, w_fused, b_fused, wlin_pad, blin_pad):
    """Run the module's forward() for every char in `chars`, carrying hidden.

    Returns (outs (T,1,1,OUTPUT_SIZE), hidden (N_LAYERS,1,HIDDEN_SIZE))."""
    T = chars.shape[0]
    h0 = hidden.reshape(N_LAYERS, HIDDEN_SIZE)

    def resident(arr):
        nd = arr.ndim
        return pl.BlockSpec(arr.shape, lambda t, cr, _nd=nd: (0,) * _nd)

    grid_spec = pltpu.PrefetchScalarGridSpec(
        num_scalar_prefetch=1,
        grid=(T,),
        in_specs=[resident(emb_pad), resident(h0), resident(w_fused),
                  resident(b_fused), resident(wlin_pad), resident(blin_pad)],
        out_specs=(
            pl.BlockSpec((T, O_PAD), lambda t, cr: (0, 0)),
            pl.BlockSpec((N_LAYERS, HIDDEN_SIZE), lambda t, cr: (0, 0)),
        ),
        scratch_shapes=[pltpu.VMEM((N_LAYERS, HIDDEN_SIZE), jnp.float32)],
    )

    out_pad, h_out = pl.pallas_call(
        rnn_seq_kernel,
        out_shape=(jax.ShapeDtypeStruct((T, O_PAD), jnp.float32),
                   jax.ShapeDtypeStruct((N_LAYERS, HIDDEN_SIZE), jnp.float32)),
        grid_spec=grid_spec,
        compiler_params=pltpu.CompilerParams(
            dimension_semantics=("arbitrary",)),   # recurrence -> sequential grid
    )(chars, emb_pad, h0, w_fused, b_fused, wlin_pad, blin_pad)

    outs = out_pad[:, :OUTPUT_SIZE].reshape(-1, 1, 1, OUTPUT_SIZE)
    return outs, h_out.reshape(N_LAYERS, 1, HIDDEN_SIZE)


def rnn_forward_step(input_char, hidden, emb_pad, w_fused, b_fused, wlin_pad, blin_pad):
    """Single-step API matching the PyTorch module: (out (1,1,O), hidden (L,1,H))."""
    chars = jnp.asarray(input_char, jnp.int32).reshape(1)
    outs, h = rnn_forward_seq(chars, hidden, emb_pad, w_fused, b_fused,
                              wlin_pad, blin_pad)
    return outs[0], h


# ------------------------------ parameters ------------------------------------
def make_params(key):
    """Deterministic synthetic params (PyTorch-style U(-1/sqrt(H), 1/sqrt(H)))."""
    ks = jax.random.split(key, 8)
    bound = 1.0 / np.sqrt(HIDDEN_SIZE)

    def u(k, shape):
        return jax.random.uniform(k, shape, jnp.float32, -bound, bound)

    embedding = jax.random.normal(ks[0], (N_CHARACTERS, INPUT_SIZE), jnp.float32)
    wih = [u(jax.random.fold_in(ks[1], l),
             (INPUT_SIZE if l == 0 else HIDDEN_SIZE, 3 * HIDDEN_SIZE))
           for l in range(N_LAYERS)]
    whh = [u(jax.random.fold_in(ks[2], l), (HIDDEN_SIZE, 3 * HIDDEN_SIZE))
           for l in range(N_LAYERS)]
    bih = [u(jax.random.fold_in(ks[3], l), (3 * HIDDEN_SIZE,)) for l in range(N_LAYERS)]
    bhh = [u(jax.random.fold_in(ks[4], l), (3 * HIDDEN_SIZE,)) for l in range(N_LAYERS)]
    wlin = u(ks[5], (HIDDEN_SIZE, OUTPUT_SIZE))
    blin = u(ks[6], (1, OUTPUT_SIZE))
    return dict(embedding=embedding, wih=wih, whh=whh, bih=bih, bhh=bhh,
                wlin=wlin, blin=blin)


def pack_params(p):
    """Build the fused / padded / bf16 kernel-side parameter tensors."""
    H, D = HIDDEN_SIZE, D_PAD
    emb_pad = jnp.zeros((N_CHARACTERS, D), jnp.float32).at[:, :INPUT_SIZE].set(
        p["embedding"])
    w_layers, b_layers = [], []
    for l in range(N_LAYERS):
        wih, whh = p["wih"][l], p["whh"][l]
        in_l = wih.shape[0]
        W = jnp.zeros((D + H, 4 * H), jnp.float32)
        W = W.at[:in_l, :2 * H].set(wih[:, :2 * H])            # r,z from x
        W = W.at[D:, :2 * H].set(whh[:, :2 * H])               # r,z from h
        W = W.at[:in_l, 2 * H:3 * H].set(wih[:, 2 * H:])       # n from x
        W = W.at[D:, 3 * H:].set(whh[:, 2 * H:])               # n from h
        w_layers.append(W)
        bih, bhh = p["bih"][l], p["bhh"][l]
        b_layers.append(jnp.concatenate(
            [bih[:2 * H] + bhh[:2 * H], bih[2 * H:], bhh[2 * H:]]))
    w_fused = jnp.stack(w_layers).astype(jnp.bfloat16)          # (L, D+H, 4H)
    b_fused = jnp.stack(b_layers).astype(jnp.float32)           # (L, 4H)
    wlin_pad = jnp.zeros((H, O_PAD), jnp.float32).at[:, :OUTPUT_SIZE].set(
        p["wlin"]).astype(jnp.bfloat16)
    blin_pad = jnp.zeros((1, O_PAD), jnp.float32).at[:, :OUTPUT_SIZE].set(p["blin"])
    return emb_pad, w_fused, b_fused, wlin_pad, blin_pad


# ------------------------------ reference -------------------------------------
def reference_forward_seq(chars, hidden, p):
    """Pure-JAX reference: the module's forward() applied step by step
    (PyTorch GRU semantics), mirroring the kernel's bf16-weight numerics."""
    H = HIDDEN_SIZE
    bf = jnp.bfloat16
    h = [hidden[l] for l in range(N_LAYERS)]                    # each (1, H)
    outs = []
    for t in range(chars.shape[0]):
        x = p["embedding"][chars[t]].reshape(1, INPUT_SIZE)
        for l in range(N_LAYERS):
            h_prev = h[l]
            gi = jnp.dot(x.astype(bf), p["wih"][l].astype(bf),
                         preferred_element_type=jnp.float32) + p["bih"][l]
            gh = jnp.dot(h_prev.astype(bf), p["whh"][l].astype(bf),
                         preferred_element_type=jnp.float32) + p["bhh"][l]
            r = jax.nn.sigmoid(gi[:, :H] + gh[:, :H])
            z = jax.nn.sigmoid(gi[:, H:2 * H] + gh[:, H:2 * H])
            n = jnp.tanh(gi[:, 2 * H:] + r * gh[:, 2 * H:])
            h_new = (1.0 - z) * n + z * h_prev
            h[l] = h_new
            x = h_new
        logits = jnp.dot(x.astype(bf), p["wlin"].astype(bf),
                         preferred_element_type=jnp.float32) + p["blin"]
        outs.append(jnp.maximum(logits, 0.0).reshape(1, 1, OUTPUT_SIZE))
    return jnp.stack(outs), jnp.stack(h)                         # (T,1,1,O), (L,1,H)


# ------------------------------ main -------------------------------------------
if __name__ == "__main__":
    key = jax.random.PRNGKey(0)
    pkey, ikey = jax.random.split(key)
    params = make_params(pkey)
    kparams = pack_params(params)

    T = 8
    chars = jax.random.randint(ikey, (T,), 0, N_CHARACTERS, jnp.int32)
    hidden0 = jnp.zeros((N_LAYERS, 1, HIDDEN_SIZE), jnp.float32)   # init_hidden()

    # Full-sequence decode: one pallas_call, weights resident across all T steps.
    outs, h_final = rnn_forward_seq(chars, hidden0, *kparams)
    outs, h_final = jax.block_until_ready((outs, h_final))

    # Single-step API (matches the PyTorch module's forward signature).
    out1, h1 = rnn_forward_step(chars[0], hidden0, *kparams)
    out1, h1 = jax.block_until_ready((out1, h1))

    ref_outs, ref_h = reference_forward_seq(chars, hidden0, params)

    assert outs.shape == (T, 1, 1, OUTPUT_SIZE)
    assert h_final.shape == (N_LAYERS, 1, HIDDEN_SIZE)
    assert out1.shape == (1, 1, OUTPUT_SIZE) and h1.shape == (N_LAYERS, 1, HIDDEN_SIZE)
    np.testing.assert_allclose(np.asarray(outs), np.asarray(ref_outs),
                               atol=2e-3, rtol=2e-3)
    np.testing.assert_allclose(np.asarray(h_final), np.asarray(ref_h),
                               atol=2e-3, rtol=2e-3)
    np.testing.assert_allclose(np.asarray(out1), np.asarray(ref_outs[0]),
                               atol=2e-3, rtol=2e-3)

    print("KERNEL_OK")
</pallas_src>

<mosaic_0001>
module attributes {stable_mosaic.version = 11 : i64} {
  func.func @rnn_seq_kernel(%arg0: i32, %arg1: memref<8xi32, #tpu.memory_space<smem>>, %arg2: memref<64x128xf32, #tpu.memory_space<vmem>>, %arg3: memref<5x128xf32, #tpu.memory_space<vmem>>, %arg4: memref<5x256x512xbf16, #tpu.memory_space<vmem>>, %arg5: memref<5x512xf32, #tpu.memory_space<vmem>>, %arg6: memref<128x128xbf16, #tpu.memory_space<vmem>>, %arg7: memref<1x128xf32, #tpu.memory_space<vmem>>, %arg8: memref<8x128xf32, #tpu.memory_space<vmem>>, %arg9: memref<5x128xf32, #tpu.memory_space<vmem>>, %arg10: memref<5x128xf32, #tpu.memory_space<vmem>>) attributes {dimension_semantics = [#tpu.dimension_semantics<arbitrary>], iteration_bounds = array<i64: 8>, scalar_prefetch = 1 : i64, scratch_operands = 1 : i64, tpu.core_type = #tpu.core_type<tc>, window_params = [{pipeline_mode = #tpu.pipeline_mode<synchronous>, transform_indices = @transform_0, window_bounds = array<i64: 64, 128>}, {pipeline_mode = #tpu.pipeline_mode<synchronous>, transform_indices = @transform_1, window_bounds = array<i64: 5, 128>}, {pipeline_mode = #tpu.pipeline_mode<synchronous>, transform_indices = @transform_2, window_bounds = array<i64: 5, 256, 512>}, {pipeline_mode = #tpu.pipeline_mode<synchronous>, transform_indices = @transform_3, window_bounds = array<i64: 5, 512>}, {pipeline_mode = #tpu.pipeline_mode<synchronous>, transform_indices = @transform_4, window_bounds = array<i64: 128, 128>}, {pipeline_mode = #tpu.pipeline_mode<synchronous>, transform_indices = @transform_5, window_bounds = array<i64: 1, 128>}, {pipeline_mode = #tpu.pipeline_mode<synchronous>, transform_indices = @transform_6, window_bounds = array<i64: 8, 128>}, {pipeline_mode = #tpu.pipeline_mode<synchronous>, transform_indices = @transform_7, window_bounds = array<i64: 5, 128>}]} {
    %c0_i32 = arith.constant 0 : i32
    %0 = arith.cmpi eq, %arg0, %c0_i32 : i32
    %1 = arith.extui %0 : i1 to i32
    %c0_i32_0 = arith.constant 0 : i32
    %2 = arith.cmpi ne, %1, %c0_i32_0 : i32
    scf.if %2 {
      %c0_69 = arith.constant 0 : index
      %c0_70 = arith.constant 0 : index
      %174 = vector.load %arg3[%c0_69, %c0_70] : memref<5x128xf32, #tpu.memory_space<vmem>>, vector<5x128xf32>
      %c0_71 = arith.constant 0 : index
      %c0_72 = arith.constant 0 : index
      %175 = vector.load %arg10[%c0_71, %c0_72] : memref<5x128xf32, #tpu.memory_space<vmem>>, vector<5x128xf32>
      tpu.vector_store %arg10[%c0_71, %c0_72], %174 {strides = array<i32>} : memref<5x128xf32, #tpu.memory_space<vmem>>, vector<5x128xf32>,
    } else {
    }
    %3 = arith.index_cast %arg0 : i32 to index
    %4 = memref.load %arg1[%3] : memref<8xi32, #tpu.memory_space<smem>>
    %5 = arith.index_cast %4 : i32 to index
    %c0 = arith.constant 0 : index
    %6 = vector.load %arg2[%5, %c0] : memref<64x128xf32, #tpu.memory_space<vmem>>, vector<1x128xf32>
    %c0_1 = arith.constant 0 : index
    %c0_2 = arith.constant 0 : index
    %7 = vector.load %arg10[%c0_1, %c0_2] : memref<5x128xf32, #tpu.memory_space<vmem>>, vector<1x128xf32>
    %8 = tpu.concatenate %6, %7 in 1 : vector<1x128xf32>, vector<1x128xf32> -> vector<1x256xf32>
    %9 = arith.truncf %8 : vector<1x256xf32> to vector<1x256xbf16>
    %c0_3 = arith.constant 0 : index
    %c0_4 = arith.constant 0 : index
    %c0_5 = arith.constant 0 : index
    %10 = vector.load %arg4[%c0_3, %c0_4, %c0_5] : memref<5x256x512xbf16, #tpu.memory_space<vmem>>, vector<1x256x512xbf16>
    %11 = vector.shape_cast %10 : vector<1x256x512xbf16> to vector<256x512xbf16>
    %cst = arith.constant dense<0.000000e+00> : vector<1x512xf32>
    %12 = tpu.matmul %9, %11, %cst {dimension_numbers = #tpu.dot_dimension_numbers<[1], [0], [0], [1], [0, 0, 1, 1], [], []>} : vector<1x256xbf16>, vector<256x512xbf16>, vector<1x512xf32> -> vector<1x512xf32>
    %c0_6 = arith.constant 0 : index
    %c0_7 = arith.constant 0 : index
    %13 = vector.load %arg5[%c0_6, %c0_7] : memref<5x512xf32, #tpu.memory_space<vmem>>, vector<1x512xf32>
    %14 = arith.addf %12, %13 : vector<1x512xf32>
    %15 = vector.extract_strided_slice %14 {offsets = [0, 0], sizes = [1, 128], strides = [1, 1]} : vector<1x512xf32> to vector<1x128xf32>
    %16 = arith.negf %15 : vector<1x128xf32>
    %17 = math.exp %16 : vector<1x128xf32>
    %cst_8 = arith.constant 1.000000e+00 : f32
    %18 = vector.broadcast %cst_8 : f32 to vector<1x128xf32>
    %19 = arith.addf %18, %17 : vector<1x128xf32>
    %20 = arith.divf %18, %19 : vector<1x128xf32>
    %21 = vector.extract_strided_slice %14 {offsets = [0, 128], sizes = [1, 128], strides = [1, 1]} : vector<1x512xf32> to vector<1x128xf32>
    %22 = arith.negf %21 : vector<1x128xf32>
    %23 = math.exp %22 : vector<1x128xf32>
    %cst_9 = arith.constant 1.000000e+00 : f32
    %24 = vector.broadcast %cst_9 : f32 to vector<1x128xf32>
    %25 = arith.addf %24, %23 : vector<1x128xf32>
    %26 = arith.divf %24, %25 : vector<1x128xf32>
    %27 = vector.extract_strided_slice %14 {offsets = [0, 256], sizes = [1, 128], strides = [1, 1]} : vector<1x512xf32> to vector<1x128xf32>
    %28 = vector.extract_strided_slice %14 {offsets = [0, 384], sizes = [1, 128], strides = [1, 1]} : vector<1x512xf32> to vector<1x128xf32>
    %29 = arith.mulf %20, %28 : vector<1x128xf32>
    %30 = arith.addf %27, %29 : vector<1x128xf32>
    %31 = math.tanh %30 : vector<1x128xf32>
    %cst_10 = arith.constant 1.000000e+00 : f32
    %32 = vector.broadcast %cst_10 : f32 to vector<1x128xf32>
    %33 = arith.subf %32, %26 : vector<1x128xf32>
    %34 = arith.mulf %33, %31 : vector<1x128xf32>
    %35 = arith.mulf %26, %7 : vector<1x128xf32>
    %36 = arith.addf %34, %35 : vector<1x128xf32>
    %c0_11 = arith.constant 0 : index
    %c0_12 = arith.constant 0 : index
    %37 = vector.load %arg10[%c0_11, %c0_12] : memref<5x128xf32, #tpu.memory_space<vmem>>, vector<1x128xf32>
    tpu.vector_store %arg10[%c0_11, %c0_12], %36 {strides = array<i32>} : memref<5x128xf32, #tpu.memory_space<vmem>>, vector<1x128xf32>,
    %c1 = arith.constant 1 : index
    %c0_13 = arith.constant 0 : index
    %38 = vector.load %arg10[%c1, %c0_13] : memref<5x128xf32, #tpu.memory_space<vmem>>, vector<1x128xf32>
    %39 = tpu.concatenate %36, %38 in 1 : vector<1x128xf32>, vector<1x128xf32> -> vector<1x256xf32>
    %40 = arith.truncf %39 : vector<1x256xf32> to vector<1x256xbf16>
    %c1_14 = arith.constant 1 : index
    %c0_15 = arith.constant 0 : index
    %c0_16 = arith.constant 0 : index
    %41 = vector.load %arg4[%c1_14, %c0_15, %c0_16] : memref<5x256x512xbf16, #tpu.memory_space<vmem>>, vector<1x256x512xbf16>
    %42 = vector.shape_cast %41 : vector<1x256x512xbf16> to vector<256x512xbf16>
    %cst_17 = arith.constant dense<0.000000e+00> : vector<1x512xf32>
    %43 = tpu.matmul %40, %42, %cst_17 {dimension_numbers = #tpu.dot_dimension_numbers<[1], [0], [0], [1], [0, 0, 1, 1], [], []>} : vector<1x256xbf16>, vector<256x512xbf16>, vector<1x512xf32> -> vector<1x512xf32>
    %c1_18 = arith.constant 1 : index
    %c0_19 = arith.constant 0 : index
    %44 = vector.load %arg5[%c1_18, %c0_19] : memref<5x512xf32, #tpu.memory_space<vmem>>, vector<1x512xf32>
    %45 = arith.addf %43, %44 : vector<1x512xf32>
    %46 = vector.extract_strided_slice %45 {offsets = [0, 0], sizes = [1, 128], strides = [1, 1]} : vector<1x512xf32> to vector<1x128xf32>
    %47 = arith.negf %46 : vector<1x128xf32>
    %48 = math.exp %47 : vector<1x128xf32>
    %cst_20 = arith.constant 1.000000e+00 : f32
    %49 = vector.broadcast %cst_20 : f32 to vector<1x128xf32>
    %50 = arith.addf %49, %48 : vector<1x128xf32>
    %51 = arith.divf %49, %50 : vector<1x128xf32>
    %52 = vector.extract_strided_slice %45 {offsets = [0, 128], sizes = [1, 128], strides = [1, 1]} : vector<1x512xf32> to vector<1x128xf32>
    %53 = arith.negf %52 : vector<1x128xf32>
    %54 = math.exp %53 : vector<1x128xf32>
    %cst_21 = arith.constant 1.000000e+00 : f32
    %55 = vector.broadcast %cst_21 : f32 to vector<1x128xf32>
    %56 = arith.addf %55, %54 : vector<1x128xf32>
    %57 = arith.divf %55, %56 : vector<1x128xf32>
    %58 = vector.extract_strided_slice %45 {offsets = [0, 256], sizes = [1, 128], strides = [1, 1]} : vector<1x512xf32> to vector<1x128xf32>
    %59 = vector.extract_strided_slice %45 {offsets = [0, 384], sizes = [1, 128], strides = [1, 1]} : vector<1x512xf32> to vector<1x128xf32>
    %60 = arith.mulf %51, %59 : vector<1x128xf32>
    %61 = arith.addf %58, %60 : vector<1x128xf32>
    %62 = math.tanh %61 : vector<1x128xf32>
    %cst_22 = arith.constant 1.000000e+00 : f32
    %63 = vector.broadcast %cst_22 : f32 to vector<1x128xf32>
    %64 = arith.subf %63, %57 : vector<1x128xf32>
    %65 = arith.mulf %64, %62 : vector<1x128xf32>
    %66 = arith.mulf %57, %38 : vector<1x128xf32>
    %67 = arith.addf %65, %66 : vector<1x128xf32>
    %c1_23 = arith.constant 1 : index
    %c0_24 = arith.constant 0 : index
    %68 = vector.load %arg10[%c1_23, %c0_24] : memref<5x128xf32, #tpu.memory_space<vmem>>, vector<1x128xf32>
    tpu.vector_store %arg10[%c1_23, %c0_24], %67 {strides = array<i32>} : memref<5x128xf32, #tpu.memory_space<vmem>>, vector<1x128xf32>,
    %c2 = arith.constant 2 : index
    %c0_25 = arith.constant 0 : index
    %69 = vector.load %arg10[%c2, %c0_25] : memref<5x128xf32, #tpu.memory_space<vmem>>, vector<1x128xf32>
    %70 = tpu.concatenate %67, %69 in 1 : vector<1x128xf32>, vector<1x128xf32> -> vector<1x256xf32>
    %71 = arith.truncf %70 : vector<1x256xf32> to vector<1x256xbf16>
    %c2_26 = arith.constant 2 : index
    %c0_27 = arith.constant 0 : index
    %c0_28 = arith.constant 0 : index
    %72 = vector.load %arg4[%c2_26, %c0_27, %c0_28] : memref<5x256x512xbf16, #tpu.memory_space<vmem>>, vector<1x256x512xbf16>
    %73 = vector.shape_cast %72 : vector<1x256x512xbf16> to vector<256x512xbf16>
    %cst_29 = arith.constant dense<0.000000e+00> : vector<1x512xf32>
    %74 = tpu.matmul %71, %73, %cst_29 {dimension_numbers = #tpu.dot_dimension_numbers<[1], [0], [0], [1], [0, 0, 1, 1], [], []>} : vector<1x256xbf16>, vector<256x512xbf16>, vector<1x512xf32> -> vector<1x512xf32>
    %c2_30 = arith.constant 2 : index
    %c0_31 = arith.constant 0 : index
    %75 = vector.load %arg5[%c2_30, %c0_31] : memref<5x512xf32, #tpu.memory_space<vmem>>, vector<1x512xf32>
    %76 = arith.addf %74, %75 : vector<1x512xf32>
    %77 = vector.extract_strided_slice %76 {offsets = [0, 0], sizes = [1, 128], strides = [1, 1]} : vector<1x512xf32> to vector<1x128xf32>
    %78 = arith.negf %77 : vector<1x128xf32>
    %79 = math.exp %78 : vector<1x128xf32>
    %cst_32 = arith.constant 1.000000e+00 : f32
    %80 = vector.broadcast %cst_32 : f32 to vector<1x128xf32>
    %81 = arith.addf %80, %79 : vector<1x128xf32>
    %82 = arith.divf %80, %81 : vector<1x128xf32>
    %83 = vector.extract_strided_slice %76 {offsets = [0, 128], sizes = [1, 128], strides = [1, 1]} : vector<1x512xf32> to vector<1x128xf32>
    %84 = arith.negf %83 : vector<1x128xf32>
    %85 = math.exp %84 : vector<1x128xf32>
    %cst_33 = arith.constant 1.000000e+00 : f32
    %86 = vector.broadcast %cst_33 : f32 to vector<1x128xf32>
    %87 = arith.addf %86, %85 : vector<1x128xf32>
    %88 = arith.divf %86, %87 : vector<1x128xf32>
    %89 = vector.extract_strided_slice %76 {offsets = [0, 256], sizes = [1, 128], strides = [1, 1]} : vector<1x512xf32> to vector<1x128xf32>
    %90 = vector.extract_strided_slice %76 {offsets = [0, 384], sizes = [1, 128], strides = [1, 1]} : vector<1x512xf32> to vector<1x128xf32>
    %91 = arith.mulf %82, %90 : vector<1x128xf32>
    %92 = arith.addf %89, %91 : vector<1x128xf32>
    %93 = math.tanh %92 : vector<1x128xf32>
    %cst_34 = arith.constant 1.000000e+00 : f32
    %94 = vector.broadcast %cst_34 : f32 to vector<1x128xf32>
    %95 = arith.subf %94, %88 : vector<1x128xf32>
    %96 = arith.mulf %95, %93 : vector<1x128xf32>
    %97 = arith.mulf %88, %69 : vector<1x128xf32>
    %98 = arith.addf %96, %97 : vector<1x128xf32>
    %c2_35 = arith.constant 2 : index
    %c0_36 = arith.constant 0 : index
    %99 = vector.load %arg10[%c2_35, %c0_36] : memref<5x128xf32, #tpu.memory_space<vmem>>, vector<1x128xf32>
    tpu.vector_store %arg10[%c2_35, %c0_36], %98 {strides = array<i32>} : memref<5x128xf32, #tpu.memory_space<vmem>>, vector<1x128xf32>,
    %c3 = arith.constant 3 : index
    %c0_37 = arith.constant 0 : index
    %100 = vector.load %arg10[%c3, %c0_37] : memref<5x128xf32, #tpu.memory_space<vmem>>, vector<1x128xf32>
    %101 = tpu.concatenate %98, %100 in 1 : vector<1x128xf32>, vector<1x128xf32> -> vector<1x256xf32>
    %102 = arith.truncf %101 : vector<1x256xf32> to vector<1x256xbf16>
    %c3_38 = arith.constant 3 : index
    %c0_39 = arith.constant 0 : index
    %c0_40 = arith.constant 0 : index
    %103 = vector.load %arg4[%c3_38, %c0_39, %c0_40] : memref<5x256x512xbf16, #tpu.memory_space<vmem>>, vector<1x256x512xbf16>
    %104 = vector.shape_cast %103 : vector<1x256x512xbf16> to vector<256x512xbf16>
    %cst_41 = arith.constant dense<0.000000e+00> : vector<1x512xf32>
    %105 = tpu.matmul %102, %104, %cst_41 {dimension_numbers = #tpu.dot_dimension_numbers<[1], [0], [0], [1], [0, 0, 1, 1], [], []>} : vector<1x256xbf16>, vector<256x512xbf16>, vector<1x512xf32> -> vector<1x512xf32>
    %c3_42 = arith.constant 3 : index
    %c0_43 = arith.constant 0 : index
    %106 = vector.load %arg5[%c3_42, %c0_43] : memref<5x512xf32, #tpu.memory_space<vmem>>, vector<1x512xf32>
    %107 = arith.addf %105, %106 : vector<1x512xf32>
    %108 = vector.extract_strided_slice %107 {offsets = [0, 0], sizes = [1, 128], strides = [1, 1]} : vector<1x512xf32> to vector<1x128xf32>
    %109 = arith.negf %108 : vector<1x128xf32>
    %110 = math.exp %109 : vector<1x128xf32>
    %cst_44 = arith.constant 1.000000e+00 : f32
    %111 = vector.broadcast %cst_44 : f32 to vector<1x128xf32>
    %112 = arith.addf %111, %110 : vector<1x128xf32>
    %113 = arith.divf %111, %112 : vector<1x128xf32>
    %114 = vector.extract_strided_slice %107 {offsets = [0, 128], sizes = [1, 128], strides = [1, 1]} : vector<1x512xf32> to vector<1x128xf32>
    %115 = arith.negf %114 : vector<1x128xf32>
    %116 = math.exp %115 : vector<1x128xf32>
    %cst_45 = arith.constant 1.000000e+00 : f32
    %117 = vector.broadcast %cst_45 : f32 to vector<1x128xf32>
    %118 = arith.addf %117, %116 : vector<1x128xf32>
    %119 = arith.divf %117, %118 : vector<1x128xf32>
    %120 = vector.extract_strided_slice %107 {offsets = [0, 256], sizes = [1, 128], strides = [1, 1]} : vector<1x512xf32> to vector<1x128xf32>
    %121 = vector.extract_strided_slice %107 {offsets = [0, 384], sizes = [1, 128], strides = [1, 1]} : vector<1x512xf32> to vector<1x128xf32>
    %122 = arith.mulf %113, %121 : vector<1x128xf32>
    %123 = arith.addf %120, %122 : vector<1x128xf32>
    %124 = math.tanh %123 : vector<1x128xf32>
    %cst_46 = arith.constant 1.000000e+00 : f32
    %125 = vector.broadcast %cst_46 : f32 to vector<1x128xf32>
    %126 = arith.subf %125, %119 : vector<1x128xf32>
    %127 = arith.mulf %126, %124 : vector<1x128xf32>
    %128 = arith.mulf %119, %100 : vector<1x128xf32>
    %129 = arith.addf %127, %128 : vector<1x128xf32>
    %c3_47 = arith.constant 3 : index
    %c0_48 = arith.constant 0 : index
    %130 = vector.load %arg10[%c3_47, %c0_48] : memref<5x128xf32, #tpu.memory_space<vmem>>, vector<1x128xf32>
    tpu.vector_store %arg10[%c3_47, %c0_48], %129 {strides = array<i32>} : memref<5x128xf32, #tpu.memory_space<vmem>>, vector<1x128xf32>,
    %c4 = arith.constant 4 : index
    %c0_49 = arith.constant 0 : index
    %131 = vector.load %arg10[%c4, %c0_49] : memref<5x128xf32, #tpu.memory_space<vmem>>, vector<1x128xf32>
    %132 = tpu.concatenate %129, %131 in 1 : vector<1x128xf32>, vector<1x128xf32> -> vector<1x256xf32>
    %133 = arith.truncf %132 : vector<1x256xf32> to vector<1x256xbf16>
    %c4_50 = arith.constant 4 : index
    %c0_51 = arith.constant 0 : index
    %c0_52 = arith.constant 0 : index
    %134 = vector.load %arg4[%c4_50, %c0_51, %c0_52] : memref<5x256x512xbf16, #tpu.memory_space<vmem>>, vector<1x256x512xbf16>
    %135 = vector.shape_cast %134 : vector<1x256x512xbf16> to vector<256x512xbf16>
    %cst_53 = arith.constant dense<0.000000e+00> : vector<1x512xf32>
    %136 = tpu.matmul %133, %135, %cst_53 {dimension_numbers = #tpu.dot_dimension_numbers<[1], [0], [0], [1], [0, 0, 1, 1], [], []>} : vector<1x256xbf16>, vector<256x512xbf16>, vector<1x512xf32> -> vector<1x512xf32>
    %c4_54 = arith.constant 4 : index
    %c0_55 = arith.constant 0 : index
    %137 = vector.load %arg5[%c4_54, %c0_55] : memref<5x512xf32, #tpu.memory_space<vmem>>, vector<1x512xf32>
    %138 = arith.addf %136, %137 : vector<1x512xf32>
    %139 = vector.extract_strided_slice %138 {offsets = [0, 0], sizes = [1, 128], strides = [1, 1]} : vector<1x512xf32> to vector<1x128xf32>
    %140 = arith.negf %139 : vector<1x128xf32>
    %141 = math.exp %140 : vector<1x128xf32>
    %cst_56 = arith.constant 1.000000e+00 : f32
    %142 = vector.broadcast %cst_56 : f32 to vector<1x128xf32>
    %143 = arith.addf %142, %141 : vector<1x128xf32>
    %144 = arith.divf %142, %143 : vector<1x128xf32>
    %145 = vector.extract_strided_slice %138 {offsets = [0, 128], sizes = [1, 128], strides = [1, 1]} : vector<1x512xf32> to vector<1x128xf32>
    %146 = arith.negf %145 : vector<1x128xf32>
    %147 = math.exp %146 : vector<1x128xf32>
    %cst_57 = arith.constant 1.000000e+00 : f32
    %148 = vector.broadcast %cst_57 : f32 to vector<1x128xf32>
    %149 = arith.addf %148, %147 : vector<1x128xf32>
    %150 = arith.divf %148, %149 : vector<1x128xf32>
    %151 = vector.extract_strided_slice %138 {offsets = [0, 256], sizes = [1, 128], strides = [1, 1]} : vector<1x512xf32> to vector<1x128xf32>
    %152 = vector.extract_strided_slice %138 {offsets = [0, 384], sizes = [1, 128], strides = [1, 1]} : vector<1x512xf32> to vector<1x128xf32>
    %153 = arith.mulf %144, %152 : vector<1x128xf32>
    %154 = arith.addf %151, %153 : vector<1x128xf32>
    %155 = math.tanh %154 : vector<1x128xf32>
    %cst_58 = arith.constant 1.000000e+00 : f32
    %156 = vector.broadcast %cst_58 : f32 to vector<1x128xf32>
    %157 = arith.subf %156, %150 : vector<1x128xf32>
    %158 = arith.mulf %157, %155 : vector<1x128xf32>
    %159 = arith.mulf %150, %131 : vector<1x128xf32>
    %160 = arith.addf %158, %159 : vector<1x128xf32>
    %c4_59 = arith.constant 4 : index
    %c0_60 = arith.constant 0 : index
    %161 = vector.load %arg10[%c4_59, %c0_60] : memref<5x128xf32, #tpu.memory_space<vmem>>, vector<1x128xf32>
    tpu.vector_store %arg10[%c4_59, %c0_60], %160 {strides = array<i32>} : memref<5x128xf32, #tpu.memory_space<vmem>>, vector<1x128xf32>,
    %162 = arith.truncf %160 : vector<1x128xf32> to vector<1x128xbf16>
    %c0_61 = arith.constant 0 : index
    %c0_62 = arith.constant 0 : index
    %163 = vector.load %arg6[%c0_61, %c0_62] : memref<128x128xbf16, #tpu.memory_space<vmem>>, vector<128x128xbf16>
    %cst_63 = arith.constant dense<0.000000e+00> : vector<1x128xf32>
    %164 = tpu.matmul %162, %163, %cst_63 {dimension_numbers = #tpu.dot_dimension_numbers<[1], [0], [0], [1], [0, 0, 1, 1], [], []>} : vector<1x128xbf16>, vector<128x128xbf16>, vector<1x128xf32> -> vector<1x128xf32>
    %c0_64 = arith.constant 0 : index
    %c0_65 = arith.constant 0 : index
    %165 = vector.load %arg7[%c0_64, %c0_65] : memref<1x128xf32, #tpu.memory_space<vmem>>, vector<1x128xf32>
    %166 = arith.addf %164, %165 : vector<1x128xf32>
    %cst_66 = arith.constant 0.000000e+00 : f32
    %167 = vector.broadcast %cst_66 : f32 to vector<1x128xf32>
    %168 = arith.maximumf %166, %167 : vector<1x128xf32>
    %169 = arith.index_cast %arg0 : i32 to index
    %c0_67 = arith.constant 0 : index
    %170 = vector.load %arg8[%169, %c0_67] : memref<8x128xf32, #tpu.memory_space<vmem>>, vector<1x128xf32>
    tpu.vector_store %arg8[%169, %c0_67], %168 {strides = array<i32>} : memref<8x128xf32, #tpu.memory_space<vmem>>, vector<1x128xf32>,
    %c7_i32 = arith.constant 7 : i32
    %171 = arith.cmpi eq, %arg0, %c7_i32 : i32
    %172 = arith.extui %171 : i1 to i32
    %c0_i32_68 = arith.constant 0 : i32
    %173 = arith.cmpi ne, %172, %c0_i32_68 : i32
    scf.if %173 {
      %c0_69 = arith.constant 0 : index
      %c0_70 = arith.constant 0 : index
      %174 = vector.load %arg10[%c0_69, %c0_70] : memref<5x128xf32, #tpu.memory_space<vmem>>, vector<5x128xf32>
      %c0_71 = arith.constant 0 : index
      %c0_72 = arith.constant 0 : index
      %175 = vector.load %arg9[%c0_71, %c0_72] : memref<5x128xf32, #tpu.memory_space<vmem>>, vector<5x128xf32>
      tpu.vector_store %arg9[%c0_71, %c0_72], %174 {strides = array<i32>} : memref<5x128xf32, #tpu.memory_space<vmem>>, vector<5x128xf32>,
    } else {
    }
    return
  }
  func.func @transform_0(%arg0: i32, %arg1: memref<8xi32, #tpu.memory_space<smem>>) -> (i32, i32) {
    %c0_i32 = arith.constant 0 : i32
    %c0_i32_0 = arith.constant 0 : i32
    %c0_i32_1 = arith.constant 0 : i32
    return %c0_i32, %c0_i32_0 : i32, i32
  }
  func.func @transform_1(%arg0: i32, %arg1: memref<8xi32, #tpu.memory_space<smem>>) -> (i32, i32) {
    %c0_i32 = arith.constant 0 : i32
    %c0_i32_0 = arith.constant 0 : i32
    %c0_i32_1 = arith.constant 0 : i32
    return %c0_i32, %c0_i32_0 : i32, i32
  }
  func.func @transform_2(%arg0: i32, %arg1: memref<8xi32, #tpu.memory_space<smem>>) -> (i32, i32, i32) {
    %c0_i32 = arith.constant 0 : i32
    %c0_i32_0 = arith.constant 0 : i32
    %c0_i32_1 = arith.constant 0 : i32
    %c0_i32_2 = arith.constant 0 : i32
    return %c0_i32, %c0_i32_0, %c0_i32_1 : i32, i32, i32
  }
  func.func @transform_3(%arg0: i32, %arg1: memref<8xi32, #tpu.memory_space<smem>>) -> (i32, i32) {
    %c0_i32 = arith.constant 0 : i32
    %c0_i32_0 = arith.constant 0 : i32
    %c0_i32_1 = arith.constant 0 : i32
    return %c0_i32, %c0_i32_0 : i32, i32
  }
  func.func @transform_4(%arg0: i32, %arg1: memref<8xi32, #tpu.memory_space<smem>>) -> (i32, i32) {
    %c0_i32 = arith.constant 0 : i32
    %c0_i32_0 = arith.constant 0 : i32
    %c0_i32_1 = arith.constant 0 : i32
    return %c0_i32, %c0_i32_0 : i32, i32
  }
  func.func @transform_5(%arg0: i32, %arg1: memref<8xi32, #tpu.memory_space<smem>>) -> (i32, i32) {
    %c0_i32 = arith.constant 0 : i32
    %c0_i32_0 = arith.constant 0 : i32
    %c0_i32_1 = arith.constant 0 : i32
    return %c0_i32, %c0_i32_0 : i32, i32
  }
  func.func @transform_6(%arg0: i32, %arg1: memref<8xi32, #tpu.memory_space<smem>>) -> (i32, i32) {
    %c0_i32 = arith.constant 0 : i32
    %c0_i32_0 = arith.constant 0 : i32
    %c0_i32_1 = arith.constant 0 : i32
    return %c0_i32, %c0_i32_0 : i32, i32
  }
  func.func @transform_7(%arg0: i32, %arg1: memref<8xi32, #tpu.memory_space<smem>>) -> (i32, i32) {
    %c0_i32 = arith.constant 0 : i32
    %c0_i32_0 = arith.constant 0 : i32
    %c0_i32_1 = arith.constant 0 : i32
    return %c0_i32, %c0_i32_0 : i32, i32
  }
}

</mosaic_0001>

<bundles_post_ra>
// kernel: rnn_forward_seq.1
= control target key start
LH: loop header
LB: loop body
LE: loop exit
PB: predicated region body
PF: predicated region fallthrough
CT: control target
= control target key end

     0   :  { %s4619_s0 = inlined_call_operand.hbm [shape: s32[8], index: 0, kind: input, shape index: {}]   ;;  %s4620_s1 = inlined_call_operand.hbm [shape: f32[64,128], index: 1, kind: input, shape index: {}]   ;;  %s4621_s2 = inlined_call_operand.vmem [shape: f32[5,128], index: 2, kind: input, shape index: {}]   ;;  %s4622_s3 = inlined_call_operand.hbm [shape: bf16[5,256,512], index: 3, kind: input, shape index: {}]   ;;  %s4623_s4 = inlined_call_operand.hbm [shape: f32[5,512], index: 4, kind: input, shape index: {}]   ;;  %s4624_s5 = inlined_call_operand.hbm [shape: bf16[128,128], index: 5, kind: input, shape index: {}]   ;;  %s4625_s6 = inlined_call_operand.hbm [shape: f32[1,128], index: 6, kind: input, shape index: {}]   ;;  %s4626_s7 = inlined_call_operand.hbm [shape: f32[8,128], index: 7, kind: output, shape index: {0}]   ;;  %s4627_s8 = inlined_call_operand.vmem [shape: f32[5,128], index: 8, kind: output, shape index: {1}]  }
   0x1   :  { %s4101_s29 = scalar_lea.hbm %s4619_s0, 16 }
   0x2   :  { %p4102_p0 = scmp.ne.s32.totalorder %s4619_s0, %s4101_s29  ;;  %p4105_p1 = scmp.lt.u32.totalorder %s4101_s29, %s4619_s0 }
   0x4   :  { %p4107_p2 = pnand %p4105_p1, %p4102_p0 }
   0x6   :  { %4110 = shalt.err (!%p4107_p2)  }
   0x7   :  { %s4303_s12 = smov [#allocation4]  }
   0x8   :  { %15 = dma.hbm_to_smem %s4619_s0, 16, %s4303_s12, [#allocation3] }
   0x9   :  { %4281 = dma.done.wait [#allocation3], 16 }
   0xa   :  { %4282 = vsyncadd [#allocation3], 4294967280 }
   0xb   :  { %17 = sfence }
   0xc   :  { %18 = vsyncpa [#allocation6], 0 }
   0xd   :  { %19 = vsyncpa [#allocation9], 0 }
   0xe   :  { %20 = vsyncpa [#allocation12], 0 }
   0xf   :  { %21 = vsyncpa [#allocation7], 0  ;;  %s4375_s15 = smov 0  }
  0x10 LB: > { %s4304_s16 = smov [#allocation8]   ;;  %s4381_s0 = sadd.s32 4294967295, %s4301_s15   ;;  %s4301_s15 = sphi %s4375_s15, %s27_s15  }
  0x11   : > { %s228_s17 = sshll.u32 %s4304_s16, 4  ;;  %p3098_p3 = scmp.ge.s32.totalorder %s4301_s15, 1  ;;  %s4387_s17 = int_to_ptr.vmem [resolvable:$true] %s228_s17 }
  0x12   : > { %p200_p4 = scmp.lt.s32.totalorder %s4301_s15, 9  ;;  %p4628_p6 = scmp.eq.s32.totalorder %s4381_s0, 0 }
  0x13   : > { %s4305_s19 = smov [#allocation11]   ;;  %s4306_s22 = smov [#allocation5]  }
  0x14   : > { %p4389_p7 = pnand %p3098_p3, %p200_p4  ;;  %s252_s20 = sshll.u32 %s4305_s19, 4  ;;  %s4395_s20 = int_to_ptr.vmem [resolvable:$true] %s252_s20 }
  0x15   : > { %s4403_s23 = sshll.u32 %s4306_s22, 4  ;;  %s4111_s26 = scalar_lea.hbm %s4622_s3, 40960  ;;  %s213_s23 = int_to_ptr.vmem [resolvable:$true] %s4403_s23 }
  0x16   : > { %s4630_s18 = scalar_select %p4389_p7, 1, 0 }
  0x17   : > { %p3511_p8 = pneg %p4389_p7  ;;  %p4112_p10 = scmp.ne.s32.totalorder %s4622_s3, %s4111_s26 }
  0x18   : > { %p4118_p0 = scmp.lt.u32.totalorder %s4111_s26, %s4622_s3 }
  0x19   : > { %p4399_p9 = pnand %p4628_p6, %p3511_p8 }
  0x1b   : > { %p4413_p11 = pneg %p4399_p9 }
  0x1d   : > { %p4114_p12 = pnand %p4413_p11, %p4112_p10 }
  0x1f   : > { %p4115_p13 = pneg %p4114_p12 }
  0x21   : > { %p4120_p1 = pnand %p4118_p0, %p4115_p13 }
  0x23   : > { %4123 = shalt.err (!%p4120_p1)
}
  0x24   : > { %s4124_s10 = scalar_lea.vmem %s4387_s17, 40960  ;;  %p4132_p8 = scmp.lt.s32.totalorder %s4387_s17, %s4387_s17 }
  0x25   : > { %p4125_p2 = scmp.ne.s32.totalorder %s4387_s17, %s4124_s10  ;;  %p4133_p5 = scmp.lt.s32.totalorder %s4124_s10, %s4124_s10 }
  0x27   : > { %p4127_p3 = pnand %p4125_p2, %p4413_p11  ;;  %p4134_p10 = por %p4133_p5, %p4132_p8 }
  0x29   : > { %p4128_p4 = pneg %p4127_p3 }
  0x2b   : > { %p4135_p12 = pnand %p4134_p10, %p4128_p4 }
  0x2d   : > { %4138 = shalt.err (!%p4135_p12)
}
  0x2e   : > { %s4307_s11 = smov 256   ;;  %s4308_s12 = smov 16  }
  0x2f   : > { %3517 = dma.hbm_to_vmem [thread:$0]  (!%p4399_p9), %s4622_s3, 40960, %s4387_s17, [#allocation9], %s4307_s11, %s4307_s11, %s4308_s12  }
  0x30   : > { %s4139_s22 = scalar_lea.hbm %s4624_s5, 1024 }
  0x31   : > { %p4140_p5 = scmp.ne.s32.totalorder %s4624_s5, %s4139_s22  ;;  %p4146_p1 = scmp.lt.u32.totalorder %s4139_s22, %s4624_s5 }
  0x33   : > { %p4142_p13 = pnand %p4140_p5, %p4413_p11 }
  0x35   : > { %p4143_p0 = pneg %p4142_p13 }
  0x37   : > { %p4148_p2 = pnand %p4146_p1, %p4143_p0 }
  0x39   : > { %4151 = shalt.err (!%p4148_p2)
}
  0x3a   : > { %s4152_s17 = scalar_lea.vmem %s4395_s20, 1024  ;;  %p4160_p10 = scmp.lt.s32.totalorder %s4395_s20, %s4395_s20 }
  0x3b   : > { %p4153_p3 = scmp.ne.s32.totalorder %s4395_s20, %s4152_s17  ;;  %p4161_p12 = scmp.lt.s32.totalorder %s4152_s17, %s4152_s17 }
  0x3d   : > { %p4155_p4 = pnand %p4153_p3, %p4413_p11  ;;  %p4162_p5 = por %p4161_p12, %p4160_p10 }
  0x3f   : > { %p4156_p8 = pneg %p4155_p4 }
  0x41   : > { %p4163_p13 = pnand %p4162_p5, %p4156_p8 }
  0x43   : > { %4166 = shalt.err (!%p4163_p13)
}
  0x44   : > { %s4309_s28 = smov 64   ;;  %s4310_s30 = smov 4  }
  0x45   : > { %3523 = dma.hbm_to_vmem [thread:$0]  (!%p4399_p9), %s4624_s5, 1024, %s4395_s20, [#allocation12], %s4309_s28, %s4309_s28, %s4310_s30  }
  0x46   : > { %s4167_s13 = scalar_lea.hbm %s4620_s1, 1024 }
  0x47   : > { %p4168_p0 = scmp.ne.s32.totalorder %s4620_s1, %s4167_s13  ;;  %p4174_p3 = scmp.lt.u32.totalorder %s4167_s13, %s4620_s1 }
  0x49   : > { %p4170_p1 = pnand %p4168_p0, %p4413_p11 }
  0x4b   : > { %p4171_p2 = pneg %p4170_p1 }
  0x4d   : > { %p4176_p4 = pnand %p4174_p3, %p4171_p2 }
  0x4f   : > { %4179 = shalt.err (!%p4176_p4)
}
  0x50   : > { %s4180_s24 = scalar_lea.vmem %s213_s23, 1024  ;;  %p4188_p5 = scmp.lt.s32.totalorder %s213_s23, %s213_s23 }
  0x51   : > { %p4181_p8 = scmp.ne.s32.totalorder %s213_s23, %s4180_s24  ;;  %p4189_p13 = scmp.lt.s32.totalorder %s4180_s24, %s4180_s24 }
  0x53   : > { %p4183_p10 = pnand %p4181_p8, %p4413_p11  ;;  %p4190_p6 = por %p4189_p13, %p4188_p5 }
  0x55   : > { %p4184_p12 = pneg %p4183_p10 }
  0x57   : > { %p4191_p7 = pnand %p4190_p6, %p4184_p12 }
  0x59   : > { %4194 = shalt.err (!%p4191_p7)
}
  0x5a   : > { %s4311_s20 = smov 128   ;;  %s4312_s25 = smov 8  }
  0x5b   : > { %3514 = dma.hbm_to_vmem [thread:$0]  (!%p4399_p9), %s4620_s1, 1024, %s213_s23, [#allocation6], %s4311_s20, %s4311_s20, %s4312_s25  }
  0x5c   : > { %s4313_s17 = smov [#allocation10]   ;;  %s4314_s30 = smov [#allocation13]  }
  0x5d   : > { %s242_s28 = sshll.u32 %s4313_s17, 4  ;;  %s266_s9 = sshll.u32 %s4314_s30, 4  ;;  %s243_s28 = int_to_ptr.vmem [resolvable:$true] %s242_s28  ;;  %s4476_s9 = int_to_ptr.vmem [resolvable:$true] %s266_s9 }
  0x5e   : > { %s4195_s12 = scalar_lea.hbm %s4623_s4, 512 }
  0x5f   : > { %p4196_p6 = scmp.ne.s32.totalorder %s4623_s4, %s4195_s12  ;;  %p4202_p1 = scmp.lt.u32.totalorder %s4195_s12, %s4623_s4 }
  0x61   : > { %p4198_p7 = pnand %p4196_p6, %p4413_p11 }
  0x63   : > { %p4199_p0 = pneg %p4198_p7 }
  0x65   : > { %p4204_p2 = pnand %p4202_p1, %p4199_p0 }
  0x67   : > { %4207 = shalt.err (!%p4204_p2)
}
  0x68   : > { %s4208_s19 = scalar_lea.vmem %s243_s28, 512  ;;  %p4216_p10 = scmp.lt.s32.totalorder %s243_s28, %s243_s28 }
  0x69   : > { %p4209_p3 = scmp.ne.s32.totalorder %s243_s28, %s4208_s19  ;;  %p4217_p12 = scmp.lt.s32.totalorder %s4208_s19, %s4208_s19 }
  0x6b   : > { %p4211_p4 = pnand %p4209_p3, %p4413_p11  ;;  %p4218_p5 = por %p4217_p12, %p4216_p10 }
  0x6d   : > { %p4212_p8 = pneg %p4211_p4 }
  0x6f   : > { %p4219_p13 = pnand %p4218_p5, %p4212_p8 }
  0x71   : > { %4222 = shalt.err (!%p4219_p13)
}
  0x72   : > { %3520 = dma.hbm_to_vmem [thread:$0]  (!%p4399_p9), %s4623_s4, 512, %s243_s28, [#allocation9]  }
  0x73   : > { %s4223_s26 = scalar_lea.hbm %s4625_s6, 16 }
  0x74   : > { %p4224_p6 = scmp.ne.s32.totalorder %s4625_s6, %s4223_s26  ;;  %p4230_p1 = scmp.lt.u32.totalorder %s4223_s26, %s4625_s6 }
  0x76   : > { %p4226_p7 = pnand %p4224_p6, %p4413_p11 }
  0x78   : > { %p4227_p0 = pneg %p4226_p7 }
  0x7a   : > { %p4232_p2 = pnand %p4230_p1, %p4227_p0 }
  0x7c   : > { %4235 = shalt.err (!%p4232_p2)
}
  0x7d   : > { %s4236_s28 = scalar_lea.vmem %s4476_s9, 16  ;;  %s4243_s11 = scalar_lea.vmem %s4476_s9, 32 }
  0x7e   : > { %p4237_p3 = scmp.ne.s32.totalorder %s4476_s9, %s4236_s28  ;;  %p4244_p10 = scmp.lt.s32.totalorder %s4476_s9, %s4476_s9 }
  0x7f   : > { %p4245_p12 = scmp.lt.s32.totalorder %s4243_s11, %s4236_s28 }
  0x80   : > { %p4239_p4 = pnand %p4237_p3, %p4413_p11 }
  0x81   : > { %p4246_p5 = por %p4245_p12, %p4244_p10 }
  0x82   : > { %p4240_p8 = pneg %p4239_p4 }
  0x84   : > { %p4247_p13 = pnand %p4246_p5, %p4240_p8 }
  0x86   : > { %4250 = shalt.err (!%p4247_p13)
}
  0x87   : > { %3526 = dma.hbm_to_vmem [thread:$0]  (!%p4399_p9), %s4625_s6, 16, %s4476_s9, [#allocation12]  }
  0x88   : > { %p4633_p6 = scmp.ne.s32.totalorder %s4630_s18, 0 }
  0x89   : > { %p4634_p11 = scmp.eq.s32.totalorder (!%p4633_p6), %s4381_s0, 0 }
  0x8a   : > { %279 = sbr.rel (%p4633_p6) target bundleno = 1774 (0x6ee), region = 44 }
  0x91   : > { %4284 = dma.done.wait (%p4634_p11), [#allocation6], 1024   ;;  %p4635_p7 = pmov %p4634_p11 }
  0x93   : > { %4286 = vsyncadd (%p4635_p7), [#allocation6], 4294966272  ;;  %p4636_p0 = pmov %p4635_p7 }
  0x95   : > { %4288 = dma.done.wait (%p4636_p0), [#allocation9], 41472   ;;  %p4637_p1 = pmov %p4636_p0 }
  0x96   : > { %p4638_p2 = pmov %p4636_p0 }
  0x97   : > { %4290 = vsyncadd (%p4637_p1), [#allocation9], 4294925824 }
  0x98   : > { %4292 = dma.done.wait (%p4638_p2), [#allocation12], 1040   ;;  %p4639_p9 = pmov %p4636_p0 }
  0x99   : > { %p4640_p3 = scmp.ne.s32.totalorder %s4381_s0, 0 }
  0x9a   : > { %4294 = vsyncadd (%p4639_p9), [#allocation12], 4294966256  ;;  %v322_v0 = vld [vmem:[%s4621_s2] sm:$0x1f] (!%p4640_p3) }
  0x9b   : > { %321 = sbr.rel (%p4640_p3) target bundleno = 162 (0xa2), region = 68  ;;  %323 = vst [vmem:[#allocation2] sm:$0x1f] (!%p4640_p3), %v322_v0 }
  0xa2 PF: > { %v3562_v1 = vld [vmem:[#allocation8 + $0x4] ss:$16 sps:$4 sm:$0xff]   ;;  %v3564_v2 = vld [vmem:[#allocation8] ss:$16 sps:$4 sm:$0xff]   ;;  %v3580_v8 = vld [vmem:[#allocation8 + $0xc] ss:$16 sps:$4 sm:$0xff]  }
  0xa3   : > { %736 = vmatprep.subr.bf16.mxu0 %v3562_v1  ;;  %v3565_v3 = vld [vmem:[#allocation8 + $0x24] ss:$16 sps:$4 sm:$0xff]   ;;  %v3567_v4 = vld [vmem:[#allocation8 + $0x20] ss:$16 sps:$4 sm:$0xff]   ;;  %v3582_v9 = vld [vmem:[#allocation8 + $0x8] ss:$16 sps:$4 sm:$0xff]   ;;  %777 = vmatprep.subr.bf16.mxu1 %v3580_v8 }
  0xa4   : > { %737 = vmatpush1.bf16.msra.mxu0 %v3564_v2  ;;  %v3568_v5 = vld [vmem:[#allocation8 + $0x44] ss:$16 sps:$4 sm:$0xff]   ;;  %v3570_v6 = vld [vmem:[#allocation8 + $0x40] ss:$16 sps:$4 sm:$0xff]   ;;  %778 = vmatpush1.bf16.msra.mxu1 %v3582_v9  ;;  %v3586_v11 = vld [vmem:[#allocation8 + $0x2c] ss:$16 sps:$4 sm:$0xff]  }
  0xa5   : > { %738 = vmatprep.subr.bf16.mxu0 %v3565_v3  ;;  %v3571_v7 = vld [vmem:[#allocation8 + $0x64] ss:$16 sps:$4 sm:$0xff]   ;;  %v3573_v10 = vld [vmem:[#allocation8 + $0x60] ss:$16 sps:$4 sm:$0xff]   ;;  %v3588_v12 = vld [vmem:[#allocation8 + $0x28] ss:$16 sps:$4 sm:$0xff]   ;;  %779 = vmatprep.subr.bf16.mxu1 %v3586_v11 }
  0xa6   : > { %v3574_v13 = vld [vmem:[#allocation8 + $0x84] ss:$16 sps:$4 sm:$0xff]   ;;  %v3576_v14 = vld [vmem:[#allocation8 + $0x80] ss:$16 sps:$4 sm:$0xff]   ;;  %v3592_v15 = vld [vmem:[#allocation8 + $0x4c] ss:$16 sps:$4 sm:$0xff]  }
  0xa7   : > { %v3577_v16 = vld [vmem:[#allocation8 + $0xa4] ss:$16 sps:$4 sm:$0xff]   ;;  %v3594_v17 = vld [vmem:[#allocation8 + $0x48] ss:$16 sps:$4 sm:$0xff]   ;;  %v3598_v18 = vld [vmem:[#allocation8 + $0x6c] ss:$16 sps:$4 sm:$0xff]  }
  0xa8   : > { %739 = vmatpush1.bf16.msra.mxu0 %v3567_v4  ;;  %780 = vmatpush1.bf16.msra.mxu1 %v3588_v12  ;;  %v3579_v19 = vld [vmem:[#allocation8 + $0xa0] ss:$16 sps:$4 sm:$0xff]   ;;  %v3583_v20 = vld [vmem:[#allocation8 + $0xc4] ss:$16 sps:$4 sm:$0xff]   ;;  %v3600_v21 = vld [vmem:[#allocation8 + $0x68] ss:$16 sps:$4 sm:$0xff]  }
  0xa9   : > { %740 = vmatprep.subr.bf16.mxu0 %v3568_v5  ;;  %781 = vmatprep.subr.bf16.mxu1 %v3592_v15  ;;  %v3604_v22 = vld [vmem:[#allocation8 + $0x8c] ss:$16 sps:$4 sm:$0xff]   ;;  %v3585_v23 = vld [vmem:[#allocation8 + $0xc0] ss:$16 sps:$4 sm:$0xff]   ;;  %v3589_v24 = vld [vmem:[#allocation8 + $0xe4] ss:$16 sps:$4 sm:$0xff]  }
  0xaa   : > { %v3606_v25 = vld [vmem:[#allocation8 + $0x88] ss:$16 sps:$4 sm:$0xff]   ;;  %v3610_v26 = vld [vmem:[#allocation8 + $0xac] ss:$16 sps:$4 sm:$0xff]   ;;  %v3591_v27 = vld [vmem:[#allocation8 + $0xe0] ss:$16 sps:$4 sm:$0xff]  }
  0xab   : > { %v3595_v28 = vld [vmem:[#allocation8 + $0x104] ss:$16 sps:$4 sm:$0xff]   ;;  %v3612_v29 = vld [vmem:[#allocation8 + $0xa8] ss:$16 sps:$4 sm:$0xff]   ;;  %v3616_v30 = vld [vmem:[#allocation8 + $0xcc] ss:$16 sps:$4 sm:$0xff]  }
  0xac   : > { %741 = vmatpush1.bf16.msra.mxu0 %v3570_v6  ;;  %782 = vmatpush1.bf16.msra.mxu1 %v3594_v17  ;;  %v3597_v31 = vld [vmem:[#allocation8 + $0x100] ss:$16 sps:$4 sm:$0xff]   ;;  %v3601_v32 = vld [vmem:[#allocation8 + $0x124] ss:$16 sps:$4 sm:$0xff]   ;;  %v3618_v33 = vld [vmem:[#allocation8 + $0xc8] ss:$16 sps:$4 sm:$0xff]  }
  0xad   : > { %742 = vmatprep.subr.bf16.mxu0 %v3571_v7  ;;  %783 = vmatprep.subr.bf16.mxu1 %v3598_v18  ;;  %v3622_v34 = vld [vmem:[#allocation8 + $0xec] ss:$16 sps:$4 sm:$0xff]   ;;  %v3603_v35 = vld [vmem:[#allocation8 + $0x120] ss:$16 sps:$4 sm:$0xff]   ;;  %v3624_v36 = vld [vmem:[#allocation8 + $0xe8] ss:$16 sps:$4 sm:$0xff]  }
  0xae   : > { %v327_v37 = vld [vmem:[#allocation2] sm:$0x1]  ;;  %v3607_v38 = vld [vmem:[#allocation8 + $0x144] ss:$16 sps:$4 sm:$0xff]   ;;  %v3628_v39 = vld [vmem:[#allocation8 + $0x10c] ss:$16 sps:$4 sm:$0xff]  }
  0xaf   : > { %v329_v40 = vpack.c.bf16 %v327_v37, %v327_v37  ;;  %v3609_v41 = vld [vmem:[#allocation8 + $0x140] ss:$16 sps:$4 sm:$0xff]   ;;  %v3630_v42 = vld [vmem:[#allocation8 + $0x108] ss:$16 sps:$4 sm:$0xff]   ;;  %v3613_v43 = vld [vmem:[#allocation8 + $0x164] ss:$16 sps:$4 sm:$0xff]  }
  0xb0   : > { %743 = vmatpush1.bf16.msra.mxu0 %v3573_v10  ;;  %784 = vmatpush1.bf16.msra.mxu1 %v3600_v21  ;;  %v3634_v44 = vld [vmem:[#allocation8 + $0x12c] ss:$16 sps:$4 sm:$0xff]   ;;  %v3615_v45 = vld [vmem:[#allocation8 + $0x160] ss:$16 sps:$4 sm:$0xff]   ;;  %v3636_v46 = vld [vmem:[#allocation8 + $0x128] ss:$16 sps:$4 sm:$0xff]  }
  0xb1   : > { %744 = vmatprep.subr.bf16.mxu0 %v3574_v13  ;;  %785 = vmatprep.subr.bf16.mxu1 %v3604_v22  ;;  %v3619_v47 = vld [vmem:[#allocation8 + $0x184] ss:$16 sps:$4 sm:$0xff]   ;;  %v3640_v48 = vld [vmem:[#allocation8 + $0x14c] ss:$16 sps:$4 sm:$0xff]   ;;  %v3621_v49 = vld [vmem:[#allocation8 + $0x180] ss:$16 sps:$4 sm:$0xff]  }
  0xb2   : > { %768 = vmatprep.mubr.bf16.mxu0 %v329_v40  ;;  %809 = vmatprep.mubr.bf16.mxu1 %v329_v40  ;;  %s324_s29 = sld [smem:[#allocation4 + %s4381_s0]]  ;;  %v3642_v50 = vld [vmem:[#allocation8 + $0x148] ss:$16 sps:$4 sm:$0xff]   ;;  %v3625_v51 = vld [vmem:[#allocation8 + $0x1a4] ss:$16 sps:$4 sm:$0xff]   ;;  %vm4316_vm0 = vmmov 0  }
  0xb3   : > { %v3643_v52 = vld [vmem:[#allocation8 + $0x16c] ss:$16 sps:$4 sm:$0xff]   ;;  %v3627_v53 = vld [vmem:[#allocation8 + $0x1a0] ss:$16 sps:$4 sm:$0xff]   ;;  %v3645_v54 = vld [vmem:[#allocation8 + $0x168] ss:$16 sps:$4 sm:$0xff]  }
  0xb4   : > { %745 = vmatpush1.bf16.msra.mxu0 %v3576_v14  ;;  %786 = vmatpush1.bf16.msra.mxu1 %v3606_v25  ;;  %v3631_v55 = vld [vmem:[#allocation8 + $0x1c4] ss:$16 sps:$4 sm:$0xff]   ;;  %v3646_v56 = vld [vmem:[#allocation8 + $0x18c] ss:$16 sps:$4 sm:$0xff]   ;;  %v3633_v57 = vld [vmem:[#allocation8 + $0x1c0] ss:$16 sps:$4 sm:$0xff]  }
  0xb5   : > { %746 = vmatprep.subr.bf16.mxu0 %v3577_v16  ;;  %787 = vmatprep.subr.bf16.mxu1 %v3610_v26  ;;  %v3648_v58 = vld [vmem:[#allocation8 + $0x188] ss:$16 sps:$4 sm:$0xff]   ;;  %v3637_v59 = vld [vmem:[#allocation8 + $0x1e4] ss:$16 sps:$4 sm:$0xff]   ;;  %v3649_v60 = vld [vmem:[#allocation8 + $0x1ac] ss:$16 sps:$4 sm:$0xff]  }
  0xb6   : > { %v3639_v61 = vld [vmem:[#allocation8 + $0x1e0] ss:$16 sps:$4 sm:$0xff]   ;;  %v3651_v63 = vld [vmem:[#allocation8 + $0x1a8] ss:$16 sps:$4 sm:$0xff]   ;;  %v3652_v0 = vld [vmem:[#allocation8 + $0x1cc] ss:$16 sps:$4 sm:$0xff]  }
  0xb7   : > { %v3660_v1 = vld [vmem:[#allocation8 + $0x204] ss:$16 sps:$4 sm:$0xff]   ;;  %v3654_v2 = vld [vmem:[#allocation8 + $0x1c8] ss:$16 sps:$4 sm:$0xff]   ;;  %v3658_v3 = vld [vmem:[#allocation8 + $0x200] ss:$16 sps:$4 sm:$0xff]  }
  0xb8   : > { %747 = vmatpush1.bf16.msra.mxu0 %v3579_v19  ;;  %788 = vmatpush1.bf16.msra.mxu1 %v3612_v29  ;;  %s325_s9 = scalar_lea.vmem [#allocation5], %s324_s29  ;;  %v3655_v5 = vld [vmem:[#allocation8 + $0x1ec] ss:$16 sps:$4 sm:$0xff]   ;;  %v3666_v6 = vld [vmem:[#allocation8 + $0x224] ss:$16 sps:$4 sm:$0xff]   ;;  %s3455_s14 = scalar_lea.vmem [#allocation14], %s4301_s15 }
  0xb9   : > { %748 = vmatprep.subr.bf16.mxu0 %v3583_v20  ;;  %789 = vmatprep.subr.bf16.mxu1 %v3616_v30  ;;  %v326_v62 = vld [vmem:[%s325_s9] sm:$0x1]  ;;  %v3664_v8 = vld [vmem:[#allocation8 + $0x220] ss:$16 sps:$4 sm:$0xff]   ;;  %v3663_v9 = vld [vmem:[#allocation8 + $0x20c] ss:$16 sps:$4 sm:$0xff]  }
  0xba   : > { %v328_v4 = vpack.c.bf16 %v326_v62, %v326_v62  ;;  %v3657_v7 = vld [vmem:[#allocation8 + $0x1e8] ss:$16 sps:$4 sm:$0xff]   ;;  %v3672_v10 = vld [vmem:[#allocation8 + $0x244] ss:$16 sps:$4 sm:$0xff]   ;;  %v3670_v12 = vld [vmem:[#allocation8 + $0x240] ss:$16 sps:$4 sm:$0xff]  }
  0xbb   : > { %v3661_v11 = vld [vmem:[#allocation8 + $0x208] ss:$16 sps:$4 sm:$0xff]   ;;  %v3669_v13 = vld [vmem:[#allocation8 + $0x22c] ss:$16 sps:$4 sm:$0xff]   ;;  %v3678_v14 = vld [vmem:[#allocation8 + $0x264] ss:$16 sps:$4 sm:$0xff]  }
  0xbc   : > { %749 = vmatpush1.bf16.msra.mxu0 %v3585_v23  ;;  %790 = vmatpush1.bf16.msra.mxu1 %v3618_v33  ;;  %v3667_v15 = vld [vmem:[#allocation8 + $0x228] ss:$16 sps:$4 sm:$0xff]   ;;  %v3676_v16 = vld [vmem:[#allocation8 + $0x260] ss:$16 sps:$4 sm:$0xff]   ;;  %v3675_v17 = vld [vmem:[#allocation8 + $0x24c] ss:$16 sps:$4 sm:$0xff]  }
  0xbd   : > { %750 = vmatprep.subr.bf16.mxu0 %v3589_v24  ;;  %791 = vmatprep.subr.bf16.mxu1 %v3622_v34  ;;  %v3673_v18 = vld [vmem:[#allocation8 + $0x248] ss:$16 sps:$4 sm:$0xff]   ;;  %v3681_v19 = vld [vmem:[#allocation8 + $0x26c] ss:$16 sps:$4 sm:$0xff]   ;;  %v3684_v21 = vld [vmem:[#allocation8 + $0x284] ss:$16 sps:$4 sm:$0xff]  }
  0xbe   : > { %v3679_v20 = vld [vmem:[#allocation8 + $0x268] ss:$16 sps:$4 sm:$0xff]   ;;  %v3687_v22 = vld [vmem:[#allocation8 + $0x28c] ss:$16 sps:$4 sm:$0xff]   ;;  %v3682_v23 = vld [vmem:[#allocation8 + $0x280] ss:$16 sps:$4 sm:$0xff]  }
  0xbf   : > { %v3685_v24 = vld [vmem:[#allocation8 + $0x288] ss:$16 sps:$4 sm:$0xff]   ;;  %v3690_v25 = vld [vmem:[#allocation8 + $0x2a4] ss:$16 sps:$4 sm:$0xff]   ;;  %v3693_v26 = vld [vmem:[#allocation8 + $0x2ac] ss:$16 sps:$4 sm:$0xff]  }
  0xc0   : > { %751 = vmatpush1.bf16.msra.mxu0 %v3591_v27  ;;  %792 = vmatpush1.bf16.msra.mxu1 %v3624_v36  ;;  %v3688_v27 = vld [vmem:[#allocation8 + $0x2a0] ss:$16 sps:$4 sm:$0xff]   ;;  %v3696_v29 = vld [vmem:[#allocation8 + $0x2c4] ss:$16 sps:$4 sm:$0xff]   ;;  %v3699_v30 = vld [vmem:[#allocation8 + $0x2cc] ss:$16 sps:$4 sm:$0xff]  }
  0xc1   : > { %752 = vmatprep.subr.bf16.mxu0 %v3595_v28  ;;  %793 = vmatprep.subr.bf16.mxu1 %v3628_v39  ;;  %v3691_v28 = vld [vmem:[#allocation8 + $0x2a8] ss:$16 sps:$4 sm:$0xff]   ;;  %v3702_v33 = vld [vmem:[#allocation8 + $0x2e4] ss:$16 sps:$4 sm:$0xff]   ;;  %v3705_v34 = vld [vmem:[#allocation8 + $0x2ec] ss:$16 sps:$4 sm:$0xff]  }
  0xc2   : > { %v3703_v36 = vld [vmem:[#allocation8 + $0x2e8] ss:$16 sps:$4 sm:$0xff]   ;;  %v3708_v37 = vld [vmem:[#allocation8 + $0x304] ss:$16 sps:$4 sm:$0xff]   ;;  %v3706_v39 = vld [vmem:[#allocation8 + $0x300] ss:$16 sps:$4 sm:$0xff]  }
  0xc3   : > { %v3709_v40 = vld [vmem:[#allocation8 + $0x308] ss:$16 sps:$4 sm:$0xff]   ;;  %v3747_v62 = vld [vmem:[#allocation8 + $0x3cc] ss:$16 sps:$4 sm:$0xff]   ;;  %p3450_p4 = scmp.ne.s32.totalorder %s4381_s0, 7 }
  0xc4   : > { %753 = vmatpush1.bf16.msra.mxu0 %v3597_v31  ;;  %794 = vmatpush1.bf16.msra.mxu1 %v3630_v42  ;;  %v3694_v31 = vld [vmem:[#allocation8 + $0x2c0] ss:$16 sps:$4 sm:$0xff]   ;;  %v3714_v42 = vld [vmem:[#allocation8 + $0x324] ss:$16 sps:$4 sm:$0xff]  }
  0xc5   : > { %754 = vmatprep.subr.bf16.mxu0 %v3601_v32  ;;  %795 = vmatprep.subr.bf16.mxu1 %v3634_v44  ;;  %v3697_v32 = vld [vmem:[#allocation8 + $0x2c8] ss:$16 sps:$4 sm:$0xff]   ;;  %v3717_v44 = vld [vmem:[#allocation8 + $0x32c] ss:$16 sps:$4 sm:$0xff]  }
  0xc8   : > { %755 = vmatpush1.bf16.msra.mxu0 %v3603_v35  ;;  %796 = vmatpush1.bf16.msra.mxu1 %v3636_v46  ;;  %v3700_v35 = vld [vmem:[#allocation8 + $0x2e0] ss:$16 sps:$4 sm:$0xff]   ;;  %v3723_v46 = vld [vmem:[#allocation8 + $0x34c] ss:$16 sps:$4 sm:$0xff]  }
  0xc9   : > { %756 = vmatprep.subr.bf16.mxu0 %v3607_v38  ;;  %797 = vmatprep.subr.bf16.mxu1 %v3640_v48  ;;  %v3711_v38 = vld [vmem:[#allocation8 + $0x30c] ss:$16 sps:$4 sm:$0xff]   ;;  %v3721_v48 = vld [vmem:[#allocation8 + $0x348] ss:$16 sps:$4 sm:$0xff]  }
  0xcc   : > { %757 = vmatpush1.bf16.msra.mxu0 %v3609_v41  ;;  %798 = vmatpush1.bf16.msra.mxu1 %v3642_v50  ;;  %v3712_v41 = vld [vmem:[#allocation8 + $0x320] ss:$16 sps:$4 sm:$0xff]   ;;  %v3729_v50 = vld [vmem:[#allocation8 + $0x36c] ss:$16 sps:$4 sm:$0xff]  }
  0xcd   : > { %758 = vmatprep.subr.bf16.mxu0 %v3613_v43  ;;  %799 = vmatprep.subr.bf16.mxu1 %v3643_v52  ;;  %v3715_v43 = vld [vmem:[#allocation8 + $0x328] ss:$16 sps:$4 sm:$0xff]  }
  0xce   : > { %v3727_v52 = vld [vmem:[#allocation8 + $0x368] ss:$16 sps:$4 sm:$0xff]  }
  0xd0   : > { %759 = vmatpush1.bf16.msra.mxu0 %v3615_v45  ;;  %800 = vmatpush1.bf16.msra.mxu1 %v3645_v54  ;;  %v3720_v45 = vld [vmem:[#allocation8 + $0x344] ss:$16 sps:$4 sm:$0xff]   ;;  %v3735_v54 = vld [vmem:[#allocation8 + $0x38c] ss:$16 sps:$4 sm:$0xff]  }
  0xd1   : > { %760 = vmatprep.subr.bf16.mxu0 %v3619_v47  ;;  %801 = vmatprep.subr.bf16.mxu1 %v3646_v56  ;;  %v3718_v47 = vld [vmem:[#allocation8 + $0x340] ss:$16 sps:$4 sm:$0xff]   ;;  %v3733_v56 = vld [vmem:[#allocation8 + $0x388] ss:$16 sps:$4 sm:$0xff]  }
  0xd4   : > { %761 = vmatpush1.bf16.msra.mxu0 %v3621_v49  ;;  %802 = vmatpush1.bf16.msra.mxu1 %v3648_v58  ;;  %v3726_v49 = vld [vmem:[#allocation8 + $0x364] ss:$16 sps:$4 sm:$0xff]   ;;  %v3741_v58 = vld [vmem:[#allocation8 + $0x3ac] ss:$16 sps:$4 sm:$0xff]  }
  0xd5   : > { %762 = vmatprep.subr.bf16.mxu0 %v3625_v51  ;;  %803 = vmatprep.subr.bf16.mxu1 %v3649_v60  ;;  %v3724_v51 = vld [vmem:[#allocation8 + $0x360] ss:$16 sps:$4 sm:$0xff]   ;;  %v3739_v60 = vld [vmem:[#allocation8 + $0x3a8] ss:$16 sps:$4 sm:$0xff]  }
  0xd8   : > { %763 = vmatpush1.bf16.msra.mxu0 %v3627_v53  ;;  %804 = vmatpush1.bf16.msra.mxu1 %v3651_v63  ;;  %v3732_v53 = vld [vmem:[#allocation8 + $0x384] ss:$16 sps:$4 sm:$0xff]   ;;  %v4540_v63 = vld [vmem:[#allocation2 + $0x1] sm:$0x1] }
  0xd9   : > { %764 = vmatprep.subr.bf16.mxu0 %v3631_v55  ;;  %805 = vmatprep.subr.bf16.mxu1 %v3652_v0  ;;  %v3730_v55 = vld [vmem:[#allocation8 + $0x380] ss:$16 sps:$4 sm:$0xff]   ;;  %v840_v0 = vpack.c.bf16 %v4540_v63, %v4540_v63 }
  0xdc   : > { %765 = vmatpush1.bf16.msra.mxu0 %v3633_v57  ;;  %806 = vmatpush1.bf16.msra.mxu1 %v3654_v2  ;;  %v3738_v57 = vld [vmem:[#allocation8 + $0x3a4] ss:$16 sps:$4 sm:$0xff]   ;;  %v3745_v2 = vld [vmem:[#allocation8 + $0x3c8] ss:$16 sps:$4 sm:$0xff]  }
  0xdd   : > { %766 = vmatprep.subr.bf16.mxu0 %v3637_v59  ;;  %807 = vmatprep.subr.bf16.mxu1 %v3655_v5  ;;  %v3736_v59 = vld [vmem:[#allocation8 + $0x3a0] ss:$16 sps:$4 sm:$0xff]  }
  0xde   : > { %v3748_v5 = vld [vmem:[#allocation8 + $0x3e0] ss:$16 sps:$4 sm:$0xff]  }
  0xe0   : > { %767 = vmatpush1.bf16.msra.mxu0 %v3639_v61  ;;  %808 = vmatpush1.bf16.msra.mxu1 %v3657_v7  ;;  %v3744_v61 = vld [vmem:[#allocation8 + $0x3c4] ss:$16 sps:$4 sm:$0xff]  }
  0xe1   : > { %1249 = vmatprep.subr.bf16.mxu0 %v3660_v1  ;;  %1290 = vmatprep.subr.bf16.mxu1 %v3663_v9  ;;  %v3742_v1 = vld [vmem:[#allocation8 + $0x3c0] ss:$16 sps:$4 sm:$0xff]   ;;  %v3756_v7 = vld [vmem:[#allocation8 + $0x404] ss:$16 sps:$4 sm:$0xff]   ;;  %v716_v9 = vlaneseq }
  0xe3   : > { %769 = vmatmul.mubr.bf16.vlgmr.msra.gmra.mrb[0].mxu0 %v328_v4  ;;  %810 = vmatmul.mubr.bf16.vlgmr.msra.gmra.mrb[0].mxu1 %v328_v4  ;;  %v3753_v4 = vld [vmem:[#allocation8 + $0x3ec] ss:$16 sps:$4 sm:$0xff]  }
  0xe4   : > { %1250 = vmatpush1.bf16.msra.mxu0 %v3658_v3  ;;  %1291 = vmatpush1.bf16.msra.mxu1 %v3661_v11  ;;  %v3750_v3 = vld [vmem:[#allocation8 + $0x3e4] ss:$16 sps:$4 sm:$0xff]  }
  0xe5   : > { %1251 = vmatprep.subr.bf16.mxu0 %v3666_v6  ;;  %1292 = vmatprep.subr.bf16.mxu1 %v3669_v13  ;;  %v3751_v6 = vld [vmem:[#allocation8 + $0x3e8] ss:$16 sps:$4 sm:$0xff]  }
  0xe6   : > { %1281 = vmatprep.mubr.bf16.mxu0 %v840_v0  ;;  %1322 = vmatprep.mubr.bf16.mxu1 %v840_v0  ;;  %v3780_v0 = vld [vmem:[#allocation8 + $0x484] ss:$16 sps:$4 sm:$0xff]  }
  0xe8   : > { %1252 = vmatpush1.bf16.msra.mxu0 %v3664_v8  ;;  %1293 = vmatpush1.bf16.msra.mxu1 %v3667_v15  ;;  %v3759_v8 = vld [vmem:[#allocation8 + $0x40c] ss:$16 sps:$4 sm:$0xff]  }
  0xe9   : > { %1253 = vmatprep.subr.bf16.mxu0 %v3672_v10  ;;  %1294 = vmatprep.subr.bf16.mxu1 %v3675_v17  ;;  %v717_v10 = vshrl.u32 %v716_v9, 7  ;;  %v3795_v9 = vld [vmem:[#allocation8 + $0x4cc] ss:$16 sps:$4 sm:$0xff]  }
  0xeb   : > { %v4544_v11 = vsub.s32 0, %v717_v10  ;;  %v4546_v13 = vsub.s32 1, %v717_v10 }
  0xec   : > { %1254 = vmatpush1.bf16.msra.mxu0 %v3670_v12  ;;  %1295 = vmatpush1.bf16.msra.mxu1 %v3673_v18  ;;  %v394_v12 = vld [vmem:[#allocation10] ss:$8 sm:$0xf] }
  0xed   : > { %1255 = vmatprep.subr.bf16.mxu0 %v3678_v14  ;;  %1296 = vmatprep.subr.bf16.mxu1 %v3681_v19  ;;  %v719_v14 = vrot.slane %v394_v12, %v4544_v11 }
  0xf0   : > { %1256 = vmatpush1.bf16.msra.mxu0 %v3676_v16  ;;  %1297 = vmatpush1.bf16.msra.mxu1 %v3679_v20  ;;  %v723_v16 = vrot.slane %v394_v12, %v4546_v13 }
  0xf1   : > { %1257 = vmatprep.subr.bf16.mxu0 %v3684_v21  ;;  %1298 = vmatprep.subr.bf16.mxu1 %v3687_v22 }
  0xf4   : > { %1258 = vmatpush1.bf16.msra.mxu0 %v3682_v23  ;;  %1299 = vmatpush1.bf16.msra.mxu1 %v3685_v24 }
  0xf5   : > { %1259 = vmatprep.subr.bf16.mxu0 %v3690_v25  ;;  %1300 = vmatprep.subr.bf16.mxu1 %v3693_v26 }
  0xf8   : > { %1260 = vmatpush1.bf16.msra.mxu0 %v3688_v27  ;;  %1301 = vmatpush1.bf16.msra.mxu1 %v3691_v28 }
  0xf9   : > { %1261 = vmatprep.subr.bf16.mxu0 %v3696_v29  ;;  %1302 = vmatprep.subr.bf16.mxu1 %v3699_v30  ;;  %v4550_v30 = vsub.s32 3, %v717_v10 }
  0xfc   : > { %1262 = vmatpush1.bf16.msra.mxu0 %v3694_v31  ;;  %1303 = vmatpush1.bf16.msra.mxu1 %v3697_v32  ;;  %v4552_v31 = vsub.s32 2, %v717_v10  ;;  %v731_v32 = vrot.slane %v394_v12, %v4550_v30  ;;  %v3790_v10 = vld [vmem:[#allocation8 + $0x4c0] ss:$16 sps:$4 sm:$0xff]  }
  0xfd   : > { %1263 = vmatprep.subr.bf16.mxu0 %v3702_v33  ;;  %1304 = vmatprep.subr.bf16.mxu1 %v3705_v34 }
 0x100   : > { %1264 = vmatpush1.bf16.msra.mxu0 %v3700_v35  ;;  %1305 = vmatpush1.bf16.msra.mxu1 %v3703_v36  ;;  %v727_v35 = vrot.slane %v394_v12, %v4552_v31  ;;  %v3793_v12 = vld [vmem:[#allocation8 + $0x4c8] ss:$16 sps:$4 sm:$0xff]  }
 0x101   : > { %1265 = vmatprep.subr.bf16.mxu0 %v3708_v37  ;;  %1306 = vmatprep.subr.bf16.mxu1 %v3711_v38 }
 0x104   : > { %1266 = vmatpush1.bf16.msra.mxu0 %v3706_v39  ;;  %1307 = vmatpush1.bf16.msra.mxu1 %v3709_v40 }
 0x105   : > { %1267 = vmatprep.subr.bf16.mxu0 %v3714_v42  ;;  %1308 = vmatprep.subr.bf16.mxu1 %v3717_v44 }
 0x108   : > { %1268 = vmatpush1.bf16.msra.mxu0 %v3712_v41  ;;  %1309 = vmatpush1.bf16.msra.mxu1 %v3715_v43 }
 0x109   : > { %1269 = vmatprep.subr.bf16.mxu0 %v3720_v45  ;;  %1310 = vmatprep.subr.bf16.mxu1 %v3723_v46  ;;  %v4100_v45 = vld [vmem:[#allocation2] sm:$0x1] }
 0x10c   : > { %1270 = vmatpush1.bf16.msra.mxu0 %v3718_v47  ;;  %1311 = vmatpush1.bf16.msra.mxu1 %v3721_v48  ;;  %v3754_v48 = vld [vmem:[#allocation8 + $0x400] ss:$16 sps:$4 sm:$0xff]  }
 0x10d   : > { %1271 = vmatprep.subr.bf16.mxu0 %v3726_v49  ;;  %1312 = vmatprep.subr.bf16.mxu1 %v3729_v50  ;;  %v3757_v49 = vld [vmem:[#allocation8 + $0x408] ss:$16 sps:$4 sm:$0xff]  }
 0x110   : > { %1272 = vmatpush1.bf16.msra.mxu0 %v3724_v51  ;;  %1313 = vmatpush1.bf16.msra.mxu1 %v3727_v52  ;;  %v3762_v51 = vld [vmem:[#allocation8 + $0x424] ss:$16 sps:$4 sm:$0xff]   ;;  %v3765_v52 = vld [vmem:[#allocation8 + $0x42c] ss:$16 sps:$4 sm:$0xff]  }
 0x111   : > { %1273 = vmatprep.subr.bf16.mxu0 %v3732_v53  ;;  %1314 = vmatprep.subr.bf16.mxu1 %v3735_v54  ;;  %v3760_v53 = vld [vmem:[#allocation8 + $0x420] ss:$16 sps:$4 sm:$0xff]   ;;  %v3763_v54 = vld [vmem:[#allocation8 + $0x428] ss:$16 sps:$4 sm:$0xff]  }
 0x114   : > { %1274 = vmatpush1.bf16.msra.mxu0 %v3730_v55  ;;  %1315 = vmatpush1.bf16.msra.mxu1 %v3733_v56  ;;  %v3768_v55 = vld [vmem:[#allocation8 + $0x444] ss:$16 sps:$4 sm:$0xff]   ;;  %v3771_v56 = vld [vmem:[#allocation8 + $0x44c] ss:$16 sps:$4 sm:$0xff]  }
 0x115   : > { %1275 = vmatprep.subr.bf16.mxu0 %v3738_v57  ;;  %1316 = vmatprep.subr.bf16.mxu1 %v3741_v58  ;;  %v3766_v57 = vld [vmem:[#allocation8 + $0x440] ss:$16 sps:$4 sm:$0xff]   ;;  %v3769_v58 = vld [vmem:[#allocation8 + $0x448] ss:$16 sps:$4 sm:$0xff]  }
 0x118   : > { %1276 = vmatpush1.bf16.msra.mxu0 %v3736_v59  ;;  %1317 = vmatpush1.bf16.msra.mxu1 %v3739_v60  ;;  %v3774_v59 = vld [vmem:[#allocation8 + $0x464] ss:$16 sps:$4 sm:$0xff]   ;;  %v3777_v60 = vld [vmem:[#allocation8 + $0x46c] ss:$16 sps:$4 sm:$0xff]  }
 0x119   : > { %1277 = vmatprep.subr.bf16.mxu0 %v3744_v61  ;;  %1318 = vmatprep.subr.bf16.mxu1 %v3747_v62  ;;  %v3772_v61 = vld [vmem:[#allocation8 + $0x460] ss:$16 sps:$4 sm:$0xff]   ;;  %v3775_v62 = vld [vmem:[#allocation8 + $0x468] ss:$16 sps:$4 sm:$0xff]  }
 0x11c   : > { %1278 = vmatpush1.bf16.msra.mxu0 %v3742_v1  ;;  %1319 = vmatpush1.bf16.msra.mxu1 %v3745_v2  ;;  %v3783_v1 = vld [vmem:[#allocation8 + $0x48c] ss:$16 sps:$4 sm:$0xff]   ;;  %v3778_v2 = vld [vmem:[#allocation8 + $0x480] ss:$16 sps:$4 sm:$0xff]  }
 0x11d   : > { %1279 = vmatprep.subr.bf16.mxu0 %v3750_v3  ;;  %1320 = vmatprep.subr.bf16.mxu1 %v3753_v4  ;;  %v3781_v3 = vld [vmem:[#allocation8 + $0x488] ss:$16 sps:$4 sm:$0xff]   ;;  %v3786_v4 = vld [vmem:[#allocation8 + $0x4a4] ss:$16 sps:$4 sm:$0xff]  }
 0x120   : > { %1280 = vmatpush1.bf16.msra.mxu0 %v3748_v5  ;;  %1321 = vmatpush1.bf16.msra.mxu1 %v3751_v6  ;;  %v3789_v5 = vld [vmem:[#allocation8 + $0x4ac] ss:$16 sps:$4 sm:$0xff]   ;;  %v3784_v6 = vld [vmem:[#allocation8 + $0x4a0] ss:$16 sps:$4 sm:$0xff]  }
 0x121   : > { %1762 = vmatprep.subr.bf16.mxu0 %v3756_v7  ;;  %1803 = vmatprep.subr.bf16.mxu1 %v3759_v8  ;;  %v3787_v7 = vld [vmem:[#allocation8 + $0x4a8] ss:$16 sps:$4 sm:$0xff]   ;;  %v3792_v8 = vld [vmem:[#allocation8 + $0x4c4] ss:$16 sps:$4 sm:$0xff]  }
 0x1b6   : > { %v770_v15 = vpop.f32.mrb[0].mxu0  ;;  %v811_v24 = vpop.f32.mrb[0].mxu1 }
 0x1b7   : > { %v771_v17 = vadd.f32 %v770_v15, %v719_v14  ;;  %v772_v18 = vpop.f32.mrb[1].mxu0  ;;  %v813_v25 = vpop.f32.mrb[1].mxu1  ;;  %v812_v38 = vadd.f32 %v811_v24, %v727_v35  ;;  %v3798_v14 = vld [vmem:[#allocation8 + $0x4e4] ss:$16 sps:$4 sm:$0xff]   ;;  %v3801_v15 = vld [vmem:[#allocation8 + $0x4ec] ss:$16 sps:$4 sm:$0xff]  }
 0x1b8   : > { %v774_v19 = vpop.f32.mrb[2].mxu0  ;;  %v773_v22 = vadd.f32 %v772_v18, %v723_v16  ;;  %v815_v26 = vpop.f32.mrb[2].mxu1  ;;  %v814_v36 = vadd.f32 %v813_v25, %v731_v32  ;;  %v3796_v16 = vld [vmem:[#allocation8 + $0x4e0] ss:$16 sps:$4 sm:$0xff]   ;;  %v3804_v18 = vld [vmem:[#allocation8 + $0x504] ss:$16 sps:$4 sm:$0xff]  }
 0x1b9   : > { %v3175_v20 = vmul.f32 -1.442695, %v771_v17  ;;  %v775_v21 = vpop.f32.mrb[3].mxu0  ;;  %v816_v27 = vpop.f32.mrb[3].mxu1  ;;  %v3799_v17 = vld [vmem:[#allocation8 + $0x4e8] ss:$16 sps:$4 sm:$0xff]  }
 0x1ba   : > { %v3176_v23 = vmul.f32 -1.442695, %v773_v22  ;;  %v3807_v19 = vld [vmem:[#allocation8 + $0x50c] ss:$16 sps:$4 sm:$0xff]   ;;  %v3805_v21 = vld [vmem:[#allocation8 + $0x508] ss:$16 sps:$4 sm:$0xff]  }
 0x1bb   : > { %4050 = vpow2.f32 %v3175_v20  ;;  %v3802_v20 = vld [vmem:[#allocation8 + $0x500] ss:$16 sps:$4 sm:$0xff]   ;;  %v3810_v22 = vld [vmem:[#allocation8 + $0x524] ss:$16 sps:$4 sm:$0xff]   ;;  %v3811_v25 = vld [vmem:[#allocation8 + $0x528] ss:$16 sps:$4 sm:$0xff]  }
 0x1bc   : > { %4052 = vpow2.f32 %v3176_v23  ;;  %v3813_v23 = vld [vmem:[#allocation8 + $0x52c] ss:$16 sps:$4 sm:$0xff]   ;;  %v3808_v24 = vld [vmem:[#allocation8 + $0x520] ss:$16 sps:$4 sm:$0xff]   ;;  %v3816_v26 = vld [vmem:[#allocation8 + $0x544] ss:$16 sps:$4 sm:$0xff]  }
 0x1bd   : > { %v3819_v27 = vld [vmem:[#allocation8 + $0x54c] ss:$16 sps:$4 sm:$0xff]   ;;  %v3822_v32 = vld [vmem:[#allocation8 + $0x564] ss:$16 sps:$4 sm:$0xff]   ;;  %v3823_v35 = vld [vmem:[#allocation8 + $0x568] ss:$16 sps:$4 sm:$0xff]  }
 0x1c5   : > { %v4051_v28 = vpop.eup %4050 }
 0x1c6   : > { %v821_v29 = vadd.f32 1.0, %v4051_v28  ;;  %v4053_v33 = vpop.eup %4052  ;;  %v3814_v28 = vld [vmem:[#allocation8 + $0x540] ss:$16 sps:$4 sm:$0xff]  }
 0x1c7   : > { %v827_v34 = vadd.f32 1.0, %v4053_v33  ;;  %v3825_v33 = vld [vmem:[#allocation8 + $0x56c] ss:$16 sps:$4 sm:$0xff]  }
 0x1c8   : > { %4054 = vrcp.f32 %v821_v29  ;;  %v3817_v29 = vld [vmem:[#allocation8 + $0x548] ss:$16 sps:$4 sm:$0xff]  }
 0x1c9   : > { %4056 = vrcp.f32 %v827_v34  ;;  %v3820_v34 = vld [vmem:[#allocation8 + $0x560] ss:$16 sps:$4 sm:$0xff]  }
 0x1d2   : > { %v4055_v37 = vpop.eup %4054 }
 0x1d3   : > { %v830_v39 = vmul.f32 %v4055_v37, %v814_v36  ;;  %v4057_v41 = vpop.eup %4056  ;;  %v3828_v36 = vld [vmem:[#allocation8 + $0x584] ss:$16 sps:$4 sm:$0xff]   ;;  %v3831_v37 = vld [vmem:[#allocation8 + $0x58c] ss:$16 sps:$4 sm:$0xff]  }
 0x1d4   : > { %v833_v42 = vsub.f32 1.0, %v4057_v41  ;;  %v835_v46 = vmul.f32 %v4100_v45, %v4057_v41  ;;  %v3837_v41 = vld [vmem:[#allocation8 + $0x5ac] ss:$16 sps:$4 sm:$0xff]  }
 0x1d5   : > { %v831_v40 = vadd.f32 %v830_v39, %v812_v38  ;;  %v3826_v38 = vld [vmem:[#allocation8 + $0x580] ss:$16 sps:$4 sm:$0xff]   ;;  %v3829_v39 = vld [vmem:[#allocation8 + $0x588] ss:$16 sps:$4 sm:$0xff]   ;;  %v3843_v45 = vld [vmem:[#allocation8 + $0x5cc] ss:$16 sps:$4 sm:$0xff]  }
 0x1d7   : > { %4058 = vtanh.f32 %v831_v40  ;;  %v3834_v40 = vld [vmem:[#allocation8 + $0x5a4] ss:$16 sps:$4 sm:$0xff]  }
 0x1e1   : > { %v4059_v43 = vpop.eup %4058 }
 0x1e2   : > { %v834_v44 = vmul.f32 %v4059_v43, %v833_v42  ;;  %v3832_v42 = vld [vmem:[#allocation8 + $0x5a0] ss:$16 sps:$4 sm:$0xff]   ;;  %v3835_v43 = vld [vmem:[#allocation8 + $0x5a8] ss:$16 sps:$4 sm:$0xff]  }
 0x1e4   : > { %v836_v47 = vadd.f32 %v835_v46, %v834_v44  ;;  %v3840_v44 = vld [vmem:[#allocation8 + $0x5c4] ss:$16 sps:$4 sm:$0xff]   ;;  %v4556_v46 = vld [vmem:[#allocation2 + $0x2] sm:$0x1] }
 0x1e6   : > { %837 = vst [vmem:[#allocation2] sm:$0x1] %v836_v47  ;;  %v839_v50 = vpack.c.bf16 %v836_v47, %v836_v47  ;;  %v1353_v47 = vpack.c.bf16 %v4556_v46, %v4556_v46 }
 0x1e8   : > { %1282 = vmatmul.mubr.bf16.vlgmr.msra.gmra.mrb[4].mxu0 %v839_v50  ;;  %1323 = vmatmul.mubr.bf16.vlgmr.msra.gmra.mrb[4].mxu1 %v839_v50  ;;  %v3846_v50 = vld [vmem:[#allocation8 + $0x5e4] ss:$16 sps:$4 sm:$0xff]  }
 0x1e9   : > { %1763 = vmatpush1.bf16.msra.mxu0 %v3754_v48  ;;  %1804 = vmatpush1.bf16.msra.mxu1 %v3757_v49  ;;  %v3838_v48 = vld [vmem:[#allocation8 + $0x5c0] ss:$16 sps:$4 sm:$0xff]   ;;  %v3841_v49 = vld [vmem:[#allocation8 + $0x5c8] ss:$16 sps:$4 sm:$0xff]  }
 0x1ea   : > { %1764 = vmatprep.subr.bf16.mxu0 %v3762_v51  ;;  %1805 = vmatprep.subr.bf16.mxu1 %v3765_v52  ;;  %v3849_v51 = vld [vmem:[#allocation8 + $0x5ec] ss:$16 sps:$4 sm:$0xff]   ;;  %v3844_v52 = vld [vmem:[#allocation8 + $0x5e0] ss:$16 sps:$4 sm:$0xff]  }
 0x1eb   : > { %1794 = vmatprep.mubr.bf16.mxu0 %v1353_v47  ;;  %1835 = vmatprep.mubr.bf16.mxu1 %v1353_v47  ;;  %v3877_v47 = vld [vmem:[#allocation8 + $0x688] ss:$16 sps:$4 sm:$0xff]  }
 0x1ed   : > { %1765 = vmatpush1.bf16.msra.mxu0 %v3760_v53  ;;  %1806 = vmatpush1.bf16.msra.mxu1 %v3763_v54  ;;  %v3847_v53 = vld [vmem:[#allocation8 + $0x5e8] ss:$16 sps:$4 sm:$0xff]   ;;  %v3852_v54 = vld [vmem:[#allocation8 + $0x604] ss:$16 sps:$4 sm:$0xff]  }
 0x1ee   : > { %1766 = vmatprep.subr.bf16.mxu0 %v3768_v55  ;;  %1807 = vmatprep.subr.bf16.mxu1 %v3771_v56  ;;  %v3855_v55 = vld [vmem:[#allocation8 + $0x60c] ss:$16 sps:$4 sm:$0xff]   ;;  %v907_v56 = vld [vmem:[#allocation10 + $0x1] ss:$8 sm:$0xf] }
 0x1f1   : > { %1767 = vmatpush1.bf16.msra.mxu0 %v3766_v57  ;;  %1808 = vmatpush1.bf16.msra.mxu1 %v3769_v58  ;;  %v1232_v57 = vrot.slane %v907_v56, %v4544_v11 }
 0x1f2   : > { %1768 = vmatprep.subr.bf16.mxu0 %v3774_v59  ;;  %1809 = vmatprep.subr.bf16.mxu1 %v3777_v60  ;;  %v1236_v60 = vrot.slane %v907_v56, %v4546_v13 }
 0x1f5   : > { %1769 = vmatpush1.bf16.msra.mxu0 %v3772_v61  ;;  %1810 = vmatpush1.bf16.msra.mxu1 %v3775_v62 }
 0x1f6   : > { %1770 = vmatprep.subr.bf16.mxu0 %v3780_v0  ;;  %1811 = vmatprep.subr.bf16.mxu1 %v3783_v1 }
 0x1f9   : > { %1771 = vmatpush1.bf16.msra.mxu0 %v3778_v2  ;;  %1812 = vmatpush1.bf16.msra.mxu1 %v3781_v3 }
 0x1fa   : > { %1772 = vmatprep.subr.bf16.mxu0 %v3786_v4  ;;  %1813 = vmatprep.subr.bf16.mxu1 %v3789_v5 }
 0x1fd   : > { %1773 = vmatpush1.bf16.msra.mxu0 %v3784_v6  ;;  %1814 = vmatpush1.bf16.msra.mxu1 %v3787_v7 }
 0x1fe   : > { %1774 = vmatprep.subr.bf16.mxu0 %v3792_v8  ;;  %1815 = vmatprep.subr.bf16.mxu1 %v3795_v9 }
 0x201   : > { %1775 = vmatpush1.bf16.msra.mxu0 %v3790_v10  ;;  %1816 = vmatpush1.bf16.msra.mxu1 %v3793_v12  ;;  %v1244_v12 = vrot.slane %v907_v56, %v4550_v30 }
 0x202   : > { %1776 = vmatprep.subr.bf16.mxu0 %v3798_v14  ;;  %1817 = vmatprep.subr.bf16.mxu1 %v3801_v15  ;;  %v1240_v14 = vrot.slane %v907_v56, %v4552_v31  ;;  %v3894_v56 = vld [vmem:[#allocation8 + $0x6e4] ss:$16 sps:$4 sm:$0xff]  }
 0x205   : > { %1777 = vmatpush1.bf16.msra.mxu0 %v3796_v16  ;;  %1818 = vmatpush1.bf16.msra.mxu1 %v3799_v17 }
 0x206   : > { %1778 = vmatprep.subr.bf16.mxu0 %v3804_v18  ;;  %1819 = vmatprep.subr.bf16.mxu1 %v3807_v19 }
 0x209   : > { %1779 = vmatpush1.bf16.msra.mxu0 %v3802_v20  ;;  %1820 = vmatpush1.bf16.msra.mxu1 %v3805_v21 }
 0x20a   : > { %1780 = vmatprep.subr.bf16.mxu0 %v3810_v22  ;;  %1821 = vmatprep.subr.bf16.mxu1 %v3813_v23 }
 0x20d   : > { %1781 = vmatpush1.bf16.msra.mxu0 %v3808_v24  ;;  %1822 = vmatpush1.bf16.msra.mxu1 %v3811_v25 }
 0x20e   : > { %1782 = vmatprep.subr.bf16.mxu0 %v3816_v26  ;;  %1823 = vmatprep.subr.bf16.mxu1 %v3819_v27  ;;  %v3850_v27 = vld [vmem:[#allocation8 + $0x600] ss:$16 sps:$4 sm:$0xff]  }
 0x211   : > { %1783 = vmatpush1.bf16.msra.mxu0 %v3814_v28  ;;  %1824 = vmatpush1.bf16.msra.mxu1 %v3817_v29  ;;  %v3853_v28 = vld [vmem:[#allocation8 + $0x608] ss:$16 sps:$4 sm:$0xff]  }
 0x212   : > { %1784 = vmatprep.subr.bf16.mxu0 %v3822_v32  ;;  %1825 = vmatprep.subr.bf16.mxu1 %v3825_v33  ;;  %v3858_v32 = vld [vmem:[#allocation8 + $0x624] ss:$16 sps:$4 sm:$0xff]   ;;  %v3861_v33 = vld [vmem:[#allocation8 + $0x62c] ss:$16 sps:$4 sm:$0xff]  }
 0x215   : > { %1785 = vmatpush1.bf16.msra.mxu0 %v3820_v34  ;;  %1826 = vmatpush1.bf16.msra.mxu1 %v3823_v35  ;;  %v3856_v34 = vld [vmem:[#allocation8 + $0x620] ss:$16 sps:$4 sm:$0xff]   ;;  %v3859_v35 = vld [vmem:[#allocation8 + $0x628] ss:$16 sps:$4 sm:$0xff]  }
 0x216   : > { %1786 = vmatprep.subr.bf16.mxu0 %v3828_v36  ;;  %1827 = vmatprep.subr.bf16.mxu1 %v3831_v37  ;;  %v3864_v36 = vld [vmem:[#allocation8 + $0x644] ss:$16 sps:$4 sm:$0xff]   ;;  %v3867_v37 = vld [vmem:[#allocation8 + $0x64c] ss:$16 sps:$4 sm:$0xff]  }
 0x219   : > { %1787 = vmatpush1.bf16.msra.mxu0 %v3826_v38  ;;  %1828 = vmatpush1.bf16.msra.mxu1 %v3829_v39  ;;  %v3865_v38 = vld [vmem:[#allocation8 + $0x648] ss:$16 sps:$4 sm:$0xff]   ;;  %v3870_v39 = vld [vmem:[#allocation8 + $0x664] ss:$16 sps:$4 sm:$0xff]  }
 0x21a   : > { %1788 = vmatprep.subr.bf16.mxu0 %v3834_v40  ;;  %1829 = vmatprep.subr.bf16.mxu1 %v3837_v41  ;;  %v3873_v40 = vld [vmem:[#allocation8 + $0x66c] ss:$16 sps:$4 sm:$0xff]   ;;  %v3868_v41 = vld [vmem:[#allocation8 + $0x660] ss:$16 sps:$4 sm:$0xff]  }
 0x21d   : > { %1789 = vmatpush1.bf16.msra.mxu0 %v3832_v42  ;;  %1830 = vmatpush1.bf16.msra.mxu1 %v3835_v43  ;;  %v3871_v42 = vld [vmem:[#allocation8 + $0x668] ss:$16 sps:$4 sm:$0xff]   ;;  %v3876_v43 = vld [vmem:[#allocation8 + $0x684] ss:$16 sps:$4 sm:$0xff]  }
 0x21e   : > { %1790 = vmatprep.subr.bf16.mxu0 %v3840_v44  ;;  %1831 = vmatprep.subr.bf16.mxu1 %v3843_v45  ;;  %v3879_v44 = vld [vmem:[#allocation8 + $0x68c] ss:$16 sps:$4 sm:$0xff]   ;;  %v3874_v45 = vld [vmem:[#allocation8 + $0x680] ss:$16 sps:$4 sm:$0xff]  }
 0x221   : > { %1791 = vmatpush1.bf16.msra.mxu0 %v3838_v48  ;;  %1832 = vmatpush1.bf16.msra.mxu1 %v3841_v49  ;;  %v3882_v48 = vld [vmem:[#allocation8 + $0x6a4] ss:$16 sps:$4 sm:$0xff]   ;;  %v3885_v49 = vld [vmem:[#allocation8 + $0x6ac] ss:$16 sps:$4 sm:$0xff]  }
 0x222   : > { %1792 = vmatprep.subr.bf16.mxu0 %v3846_v50  ;;  %1833 = vmatprep.subr.bf16.mxu1 %v3849_v51  ;;  %v3880_v50 = vld [vmem:[#allocation8 + $0x6a0] ss:$16 sps:$4 sm:$0xff]   ;;  %v3883_v51 = vld [vmem:[#allocation8 + $0x6a8] ss:$16 sps:$4 sm:$0xff]  }
 0x225   : > { %1793 = vmatpush1.bf16.msra.mxu0 %v3844_v52  ;;  %1834 = vmatpush1.bf16.msra.mxu1 %v3847_v53  ;;  %v3888_v52 = vld [vmem:[#allocation8 + $0x6c4] ss:$16 sps:$4 sm:$0xff]   ;;  %v3891_v53 = vld [vmem:[#allocation8 + $0x6cc] ss:$16 sps:$4 sm:$0xff]  }
 0x226   : > { %2275 = vmatprep.subr.bf16.mxu0 %v3852_v54  ;;  %2316 = vmatprep.subr.bf16.mxu1 %v3855_v55  ;;  %v3886_v54 = vld [vmem:[#allocation8 + $0x6c0] ss:$16 sps:$4 sm:$0xff]   ;;  %v3889_v55 = vld [vmem:[#allocation8 + $0x6c8] ss:$16 sps:$4 sm:$0xff]  }
 0x2bb   : > { %v1283_v58 = vpop.f32.mrb[4].mxu0  ;;  %v1324_v59 = vpop.f32.mrb[4].mxu1 }
 0x2bc   : > { %v1284_v61 = vadd.f32 %v1283_v58, %v1232_v57  ;;  %v1285_v62 = vpop.f32.mrb[5].mxu0  ;;  %v1326_v0 = vpop.f32.mrb[5].mxu1  ;;  %v1325_v18 = vadd.f32 %v1324_v59, %v1240_v14  ;;  %v3897_v57 = vld [vmem:[#allocation8 + $0x6ec] ss:$16 sps:$4 sm:$0xff]   ;;  %v3892_v58 = vld [vmem:[#allocation8 + $0x6e0] ss:$16 sps:$4 sm:$0xff]  }
 0x2bd   : > { %v1287_v1 = vpop.f32.mrb[6].mxu0  ;;  %v1328_v2 = vpop.f32.mrb[6].mxu1  ;;  %v1286_v6 = vadd.f32 %v1285_v62, %v1236_v60  ;;  %v1327_v16 = vadd.f32 %v1326_v0, %v1244_v12  ;;  %v3895_v59 = vld [vmem:[#allocation8 + $0x6e8] ss:$16 sps:$4 sm:$0xff]   ;;  %v3900_v60 = vld [vmem:[#allocation8 + $0x704] ss:$16 sps:$4 sm:$0xff]  }
 0x2be   : > { %v3241_v3 = vmul.f32 -1.442695, %v1284_v61  ;;  %v1288_v4 = vpop.f32.mrb[7].mxu0  ;;  %v1329_v5 = vpop.f32.mrb[7].mxu1  ;;  %v3903_v61 = vld [vmem:[#allocation8 + $0x70c] ss:$16 sps:$4 sm:$0xff]  }
 0x2bf   : > { %v3242_v7 = vmul.f32 -1.442695, %v1286_v6  ;;  %v3898_v62 = vld [vmem:[#allocation8 + $0x700] ss:$16 sps:$4 sm:$0xff]   ;;  %v3901_v0 = vld [vmem:[#allocation8 + $0x708] ss:$16 sps:$4 sm:$0xff]  }
 0x2c0   : > { %4060 = vpow2.f32 %v3241_v3  ;;  %v3906_v1 = vld [vmem:[#allocation8 + $0x724] ss:$16 sps:$4 sm:$0xff]   ;;  %v3909_v2 = vld [vmem:[#allocation8 + $0x72c] ss:$16 sps:$4 sm:$0xff]   ;;  %v3904_v3 = vld [vmem:[#allocation8 + $0x720] ss:$16 sps:$4 sm:$0xff]  }
 0x2c1   : > { %4062 = vpow2.f32 %v3242_v7  ;;  %v3907_v4 = vld [vmem:[#allocation8 + $0x728] ss:$16 sps:$4 sm:$0xff]   ;;  %v3912_v5 = vld [vmem:[#allocation8 + $0x744] ss:$16 sps:$4 sm:$0xff]   ;;  %v3915_v6 = vld [vmem:[#allocation8 + $0x74c] ss:$16 sps:$4 sm:$0xff]  }
 0x2c2   : > { %v3910_v7 = vld [vmem:[#allocation8 + $0x740] ss:$16 sps:$4 sm:$0xff]   ;;  %v3919_v14 = vld [vmem:[#allocation8 + $0x768] ss:$16 sps:$4 sm:$0xff]  }
 0x2c3   : > { %v3916_v12 = vld [vmem:[#allocation8 + $0x760] ss:$16 sps:$4 sm:$0xff]  }
 0x2ca   : > { %v4061_v8 = vpop.eup %4060 }
 0x2cb   : > { %v1334_v9 = vadd.f32 1.0, %v4061_v8  ;;  %v4063_v10 = vpop.eup %4062  ;;  %v3913_v8 = vld [vmem:[#allocation8 + $0x748] ss:$16 sps:$4 sm:$0xff]  }
 0x2cc   : > { %v1340_v15 = vadd.f32 1.0, %v4063_v10  ;;  %v3921_v10 = vld [vmem:[#allocation8 + $0x76c] ss:$16 sps:$4 sm:$0xff]  }
 0x2cd   : > { %4064 = vrcp.f32 %v1334_v9  ;;  %v3918_v9 = vld [vmem:[#allocation8 + $0x764] ss:$16 sps:$4 sm:$0xff]  }
 0x2ce   : > { %4066 = vrcp.f32 %v1340_v15  ;;  %v3924_v15 = vld [vmem:[#allocation8 + $0x784] ss:$16 sps:$4 sm:$0xff]  }
 0x2d7   : > { %v4065_v17 = vpop.eup %4064 }
 0x2d8   : > { %v1343_v19 = vmul.f32 %v4065_v17, %v1327_v16  ;;  %v4067_v21 = vpop.eup %4066  ;;  %v3927_v16 = vld [vmem:[#allocation8 + $0x78c] ss:$16 sps:$4 sm:$0xff]   ;;  %v3922_v17 = vld [vmem:[#allocation8 + $0x780] ss:$16 sps:$4 sm:$0xff]  }
 0x2d9   : > { %v1346_v22 = vsub.f32 1.0, %v4067_v21  ;;  %v1348_v25 = vmul.f32 %v4067_v21, %v4540_v63  ;;  %v3862_v63 = vld [vmem:[#allocation8 + $0x640] ss:$16 sps:$4 sm:$0xff]  }
 0x2da   : > { %v1344_v20 = vadd.f32 %v1343_v19, %v1325_v18  ;;  %v3925_v18 = vld [vmem:[#allocation8 + $0x788] ss:$16 sps:$4 sm:$0xff]   ;;  %v3930_v19 = vld [vmem:[#allocation8 + $0x7a4] ss:$16 sps:$4 sm:$0xff]   ;;  %v3928_v21 = vld [vmem:[#allocation8 + $0x7a0] ss:$16 sps:$4 sm:$0xff]  }
 0x2dc   : > { %4068 = vtanh.f32 %v1344_v20  ;;  %v3933_v20 = vld [vmem:[#allocation8 + $0x7ac] ss:$16 sps:$4 sm:$0xff]  }
 0x2e6   : > { %v4069_v23 = vpop.eup %4068 }
 0x2e7   : > { %v1347_v24 = vmul.f32 %v4069_v23, %v1346_v22  ;;  %v3931_v22 = vld [vmem:[#allocation8 + $0x7a8] ss:$16 sps:$4 sm:$0xff]   ;;  %v3936_v23 = vld [vmem:[#allocation8 + $0x7c4] ss:$16 sps:$4 sm:$0xff]  }
 0x2e9   : > { %v1349_v26 = vadd.f32 %v1348_v25, %v1347_v24  ;;  %v3939_v24 = vld [vmem:[#allocation8 + $0x7cc] ss:$16 sps:$4 sm:$0xff]   ;;  %v4565_v25 = vld [vmem:[#allocation2 + $0x3] sm:$0x1] }
 0x2eb   : > { %1350 = vst [vmem:[#allocation2 + $0x1] sm:$0x1] %v1349_v26  ;;  %v1352_v29 = vpack.c.bf16 %v1349_v26, %v1349_v26  ;;  %v1866_v26 = vpack.c.bf16 %v4565_v25, %v4565_v25 }
 0x2ed   : > { %1795 = vmatmul.mubr.bf16.vlgmr.msra.gmra.mrb[8].mxu0 %v1352_v29  ;;  %1836 = vmatmul.mubr.bf16.vlgmr.msra.gmra.mrb[8].mxu1 %v1352_v29  ;;  %v3942_v29 = vld [vmem:[#allocation8 + $0x7e4] ss:$16 sps:$4 sm:$0xff]  }
 0x2ee   : > { %2276 = vmatpush1.bf16.msra.mxu0 %v3850_v27  ;;  %2317 = vmatpush1.bf16.msra.mxu1 %v3853_v28  ;;  %v3934_v27 = vld [vmem:[#allocation8 + $0x7c0] ss:$16 sps:$4 sm:$0xff]   ;;  %v3937_v28 = vld [vmem:[#allocation8 + $0x7c8] ss:$16 sps:$4 sm:$0xff]  }
 0x2ef   : > { %2277 = vmatprep.subr.bf16.mxu0 %v3858_v32  ;;  %2318 = vmatprep.subr.bf16.mxu1 %v3861_v33  ;;  %v3945_v32 = vld [vmem:[#allocation8 + $0x7ec] ss:$16 sps:$4 sm:$0xff]   ;;  %v3940_v33 = vld [vmem:[#allocation8 + $0x7e0] ss:$16 sps:$4 sm:$0xff]  }
 0x2f0   : > { %2307 = vmatprep.mubr.bf16.mxu0 %v1866_v26  ;;  %2348 = vmatprep.mubr.bf16.mxu1 %v1866_v26  ;;  %v3973_v26 = vld [vmem:[#allocation8 + $0x888] ss:$16 sps:$4 sm:$0xff]  }
 0x2f2   : > { %2278 = vmatpush1.bf16.msra.mxu0 %v3856_v34  ;;  %2319 = vmatpush1.bf16.msra.mxu1 %v3859_v35  ;;  %v3943_v34 = vld [vmem:[#allocation8 + $0x7e8] ss:$16 sps:$4 sm:$0xff]   ;;  %v3948_v35 = vld [vmem:[#allocation8 + $0x804] ss:$16 sps:$4 sm:$0xff]  }
 0x2f3   : > { %2279 = vmatprep.subr.bf16.mxu0 %v3864_v36  ;;  %2320 = vmatprep.subr.bf16.mxu1 %v3867_v37  ;;  %v3951_v36 = vld [vmem:[#allocation8 + $0x80c] ss:$16 sps:$4 sm:$0xff]   ;;  %v1420_v37 = vld [vmem:[#allocation10 + $0x2] ss:$8 sm:$0xf] }
 0x2f6   : > { %2280 = vmatpush1.bf16.msra.mxu0 %v3862_v63  ;;  %2321 = vmatpush1.bf16.msra.mxu1 %v3865_v38  ;;  %v1745_v63 = vrot.slane %v1420_v37, %v4544_v11 }
 0x2f7   : > { %2281 = vmatprep.subr.bf16.mxu0 %v3870_v39  ;;  %2322 = vmatprep.subr.bf16.mxu1 %v3873_v40  ;;  %v1749_v40 = vrot.slane %v1420_v37, %v4546_v13 }
 0x2fa   : > { %2282 = vmatpush1.bf16.msra.mxu0 %v3868_v41  ;;  %2323 = vmatpush1.bf16.msra.mxu1 %v3871_v42 }
 0x2fb   : > { %2283 = vmatprep.subr.bf16.mxu0 %v3876_v43  ;;  %2324 = vmatprep.subr.bf16.mxu1 %v3879_v44 }
 0x2fe   : > { %2284 = vmatpush1.bf16.msra.mxu0 %v3874_v45  ;;  %2325 = vmatpush1.bf16.msra.mxu1 %v3877_v47 }
 0x2ff   : > { %2285 = vmatprep.subr.bf16.mxu0 %v3882_v48  ;;  %2326 = vmatprep.subr.bf16.mxu1 %v3885_v49 }
 0x302   : > { %2286 = vmatpush1.bf16.msra.mxu0 %v3880_v50  ;;  %2327 = vmatpush1.bf16.msra.mxu1 %v3883_v51 }
 0x303   : > { %2287 = vmatprep.subr.bf16.mxu0 %v3888_v52  ;;  %2328 = vmatprep.subr.bf16.mxu1 %v3891_v53 }
 0x306   : > { %2288 = vmatpush1.bf16.msra.mxu0 %v3886_v54  ;;  %2329 = vmatpush1.bf16.msra.mxu1 %v3889_v55  ;;  %v1757_v55 = vrot.slane %v1420_v37, %v4550_v30 }
 0x307   : > { %2289 = vmatprep.subr.bf16.mxu0 %v3894_v56  ;;  %2330 = vmatprep.subr.bf16.mxu1 %v3897_v57  ;;  %v1753_v56 = vrot.slane %v1420_v37, %v4552_v31  ;;  %v3990_v37 = vld [vmem:[#allocation8 + $0x8e4] ss:$16 sps:$4 sm:$0xff]  }
 0x30a   : > { %2290 = vmatpush1.bf16.msra.mxu0 %v3892_v58  ;;  %2331 = vmatpush1.bf16.msra.mxu1 %v3895_v59 }
 0x30b   : > { %2291 = vmatprep.subr.bf16.mxu0 %v3900_v60  ;;  %2332 = vmatprep.subr.bf16.mxu1 %v3903_v61 }
 0x30e   : > { %2292 = vmatpush1.bf16.msra.mxu0 %v3898_v62  ;;  %2333 = vmatpush1.bf16.msra.mxu1 %v3901_v0 }
 0x30f   : > { %2293 = vmatprep.subr.bf16.mxu0 %v3906_v1  ;;  %2334 = vmatprep.subr.bf16.mxu1 %v3909_v2 }
 0x312   : > { %2294 = vmatpush1.bf16.msra.mxu0 %v3904_v3  ;;  %2335 = vmatpush1.bf16.msra.mxu1 %v3907_v4 }
 0x313   : > { %2295 = vmatprep.subr.bf16.mxu0 %v3912_v5  ;;  %2336 = vmatprep.subr.bf16.mxu1 %v3915_v6  ;;  %v3946_v6 = vld [vmem:[#allocation8 + $0x800] ss:$16 sps:$4 sm:$0xff]  }
 0x316   : > { %2296 = vmatpush1.bf16.msra.mxu0 %v3910_v7  ;;  %2337 = vmatpush1.bf16.msra.mxu1 %v3913_v8  ;;  %v3949_v7 = vld [vmem:[#allocation8 + $0x808] ss:$16 sps:$4 sm:$0xff]  }
 0x317   : > { %2297 = vmatprep.subr.bf16.mxu0 %v3918_v9  ;;  %2338 = vmatprep.subr.bf16.mxu1 %v3921_v10  ;;  %v3954_v9 = vld [vmem:[#allocation8 + $0x824] ss:$16 sps:$4 sm:$0xff]   ;;  %v3957_v10 = vld [vmem:[#allocation8 + $0x82c] ss:$16 sps:$4 sm:$0xff]  }
 0x31a   : > { %2298 = vmatpush1.bf16.msra.mxu0 %v3916_v12  ;;  %2339 = vmatpush1.bf16.msra.mxu1 %v3919_v14  ;;  %v3952_v12 = vld [vmem:[#allocation8 + $0x820] ss:$16 sps:$4 sm:$0xff]   ;;  %v3955_v14 = vld [vmem:[#allocation8 + $0x828] ss:$16 sps:$4 sm:$0xff]  }
 0x31b   : > { %2299 = vmatprep.subr.bf16.mxu0 %v3924_v15  ;;  %2340 = vmatprep.subr.bf16.mxu1 %v3927_v16  ;;  %v3960_v15 = vld [vmem:[#allocation8 + $0x844] ss:$16 sps:$4 sm:$0xff]   ;;  %v3963_v16 = vld [vmem:[#allocation8 + $0x84c] ss:$16 sps:$4 sm:$0xff]  }
 0x31e   : > { %2300 = vmatpush1.bf16.msra.mxu0 %v3922_v17  ;;  %2341 = vmatpush1.bf16.msra.mxu1 %v3925_v18  ;;  %v3961_v17 = vld [vmem:[#allocation8 + $0x848] ss:$16 sps:$4 sm:$0xff]   ;;  %v3966_v18 = vld [vmem:[#allocation8 + $0x864] ss:$16 sps:$4 sm:$0xff]  }
 0x31f   : > { %2301 = vmatprep.subr.bf16.mxu0 %v3930_v19  ;;  %2342 = vmatprep.subr.bf16.mxu1 %v3933_v20  ;;  %v3969_v19 = vld [vmem:[#allocation8 + $0x86c] ss:$16 sps:$4 sm:$0xff]   ;;  %v3964_v20 = vld [vmem:[#allocation8 + $0x860] ss:$16 sps:$4 sm:$0xff]  }
 0x322   : > { %2302 = vmatpush1.bf16.msra.mxu0 %v3928_v21  ;;  %2343 = vmatpush1.bf16.msra.mxu1 %v3931_v22  ;;  %v3967_v21 = vld [vmem:[#allocation8 + $0x868] ss:$16 sps:$4 sm:$0xff]   ;;  %v3972_v22 = vld [vmem:[#allocation8 + $0x884] ss:$16 sps:$4 sm:$0xff]  }
 0x323   : > { %2303 = vmatprep.subr.bf16.mxu0 %v3936_v23  ;;  %2344 = vmatprep.subr.bf16.mxu1 %v3939_v24  ;;  %v3975_v23 = vld [vmem:[#allocation8 + $0x88c] ss:$16 sps:$4 sm:$0xff]   ;;  %v3970_v24 = vld [vmem:[#allocation8 + $0x880] ss:$16 sps:$4 sm:$0xff]  }
 0x326   : > { %2304 = vmatpush1.bf16.msra.mxu0 %v3934_v27  ;;  %2345 = vmatpush1.bf16.msra.mxu1 %v3937_v28  ;;  %v3978_v27 = vld [vmem:[#allocation8 + $0x8a4] ss:$16 sps:$4 sm:$0xff]   ;;  %v3981_v28 = vld [vmem:[#allocation8 + $0x8ac] ss:$16 sps:$4 sm:$0xff]  }
 0x327   : > { %2305 = vmatprep.subr.bf16.mxu0 %v3942_v29  ;;  %2346 = vmatprep.subr.bf16.mxu1 %v3945_v32  ;;  %v3976_v29 = vld [vmem:[#allocation8 + $0x8a0] ss:$16 sps:$4 sm:$0xff]   ;;  %v3979_v32 = vld [vmem:[#allocation8 + $0x8a8] ss:$16 sps:$4 sm:$0xff]  }
 0x32a   : > { %2306 = vmatpush1.bf16.msra.mxu0 %v3940_v33  ;;  %2347 = vmatpush1.bf16.msra.mxu1 %v3943_v34  ;;  %v3984_v33 = vld [vmem:[#allocation8 + $0x8c4] ss:$16 sps:$4 sm:$0xff]   ;;  %v3987_v34 = vld [vmem:[#allocation8 + $0x8cc] ss:$16 sps:$4 sm:$0xff]  }
 0x32b   : > { %2788 = vmatprep.subr.bf16.mxu0 %v3948_v35  ;;  %2829 = vmatprep.subr.bf16.mxu1 %v3951_v36  ;;  %v3982_v35 = vld [vmem:[#allocation8 + $0x8c0] ss:$16 sps:$4 sm:$0xff]   ;;  %v3985_v36 = vld [vmem:[#allocation8 + $0x8c8] ss:$16 sps:$4 sm:$0xff]  }
 0x3c0   : > { %v1796_v38 = vpop.f32.mrb[8].mxu0  ;;  %v1837_v39 = vpop.f32.mrb[8].mxu1 }
 0x3c1   : > { %v1797_v41 = vadd.f32 %v1796_v38, %v1745_v63  ;;  %v1798_v42 = vpop.f32.mrb[9].mxu0  ;;  %v1839_v43 = vpop.f32.mrb[9].mxu1  ;;  %v1838_v60 = vadd.f32 %v1837_v39, %v1753_v56  ;;  %v3993_v63 = vld [vmem:[#allocation8 + $0x8ec] ss:$16 sps:$4 sm:$0xff]   ;;  %v3988_v38 = vld [vmem:[#allocation8 + $0x8e0] ss:$16 sps:$4 sm:$0xff]  }
 0x3c2   : > { %v1800_v44 = vpop.f32.mrb[10].mxu0  ;;  %v1841_v45 = vpop.f32.mrb[10].mxu1  ;;  %v1799_v50 = vadd.f32 %v1798_v42, %v1749_v40  ;;  %v1840_v58 = vadd.f32 %v1839_v43, %v1757_v55  ;;  %v3991_v39 = vld [vmem:[#allocation8 + $0x8e8] ss:$16 sps:$4 sm:$0xff]   ;;  %v3996_v40 = vld [vmem:[#allocation8 + $0x904] ss:$16 sps:$4 sm:$0xff]  }
 0x3c3   : > { %v3307_v47 = vmul.f32 -1.442695, %v1797_v41  ;;  %v1801_v48 = vpop.f32.mrb[11].mxu0  ;;  %v1842_v49 = vpop.f32.mrb[11].mxu1  ;;  %v3999_v41 = vld [vmem:[#allocation8 + $0x90c] ss:$16 sps:$4 sm:$0xff]  }
 0x3c4   : > { %v3308_v51 = vmul.f32 -1.442695, %v1799_v50  ;;  %v3994_v42 = vld [vmem:[#allocation8 + $0x900] ss:$16 sps:$4 sm:$0xff]   ;;  %v3997_v43 = vld [vmem:[#allocation8 + $0x908] ss:$16 sps:$4 sm:$0xff]  }
 0x3c5   : > { %4070 = vpow2.f32 %v3307_v47  ;;  %v4002_v44 = vld [vmem:[#allocation8 + $0x924] ss:$16 sps:$4 sm:$0xff]   ;;  %v4005_v45 = vld [vmem:[#allocation8 + $0x92c] ss:$16 sps:$4 sm:$0xff]   ;;  %v4000_v47 = vld [vmem:[#allocation8 + $0x920] ss:$16 sps:$4 sm:$0xff]  }
 0x3c6   : > { %4072 = vpow2.f32 %v3308_v51  ;;  %v4003_v48 = vld [vmem:[#allocation8 + $0x928] ss:$16 sps:$4 sm:$0xff]   ;;  %v4008_v49 = vld [vmem:[#allocation8 + $0x944] ss:$16 sps:$4 sm:$0xff]   ;;  %v4011_v50 = vld [vmem:[#allocation8 + $0x94c] ss:$16 sps:$4 sm:$0xff]  }
 0x3c7   : > { %v4006_v51 = vld [vmem:[#allocation8 + $0x940] ss:$16 sps:$4 sm:$0xff]   ;;  %v4015_v56 = vld [vmem:[#allocation8 + $0x968] ss:$16 sps:$4 sm:$0xff]  }
 0x3c8   : > { %v4012_v55 = vld [vmem:[#allocation8 + $0x960] ss:$16 sps:$4 sm:$0xff]  }
 0x3cf   : > { %v4071_v52 = vpop.eup %4070 }
 0x3d0   : > { %v1847_v53 = vadd.f32 1.0, %v4071_v52  ;;  %v4073_v54 = vpop.eup %4072  ;;  %v4009_v52 = vld [vmem:[#allocation8 + $0x948] ss:$16 sps:$4 sm:$0xff]  }
 0x3d1   : > { %v1853_v57 = vadd.f32 1.0, %v4073_v54  ;;  %v4017_v54 = vld [vmem:[#allocation8 + $0x96c] ss:$16 sps:$4 sm:$0xff]  }
 0x3d2   : > { %4074 = vrcp.f32 %v1847_v53  ;;  %v4014_v53 = vld [vmem:[#allocation8 + $0x964] ss:$16 sps:$4 sm:$0xff]  }
 0x3d3   : > { %4076 = vrcp.f32 %v1853_v57  ;;  %v4020_v57 = vld [vmem:[#allocation8 + $0x984] ss:$16 sps:$4 sm:$0xff]  }
 0x3dc   : > { %v4075_v59 = vpop.eup %4074 }
 0x3dd   : > { %v1856_v61 = vmul.f32 %v4075_v59, %v1840_v58  ;;  %v4077_v0 = vpop.eup %4076  ;;  %v4023_v58 = vld [vmem:[#allocation8 + $0x98c] ss:$16 sps:$4 sm:$0xff]   ;;  %v4018_v59 = vld [vmem:[#allocation8 + $0x980] ss:$16 sps:$4 sm:$0xff]  }
 0x3de   : > { %v1859_v1 = vsub.f32 1.0, %v4077_v0  ;;  %v1861_v4 = vmul.f32 %v4077_v0, %v4556_v46  ;;  %v3958_v46 = vld [vmem:[#allocation8 + $0x840] ss:$16 sps:$4 sm:$0xff]  }
 0x3df   : > { %v1857_v62 = vadd.f32 %v1856_v61, %v1838_v60  ;;  %v4021_v60 = vld [vmem:[#allocation8 + $0x988] ss:$16 sps:$4 sm:$0xff]   ;;  %v4026_v61 = vld [vmem:[#allocation8 + $0x9a4] ss:$16 sps:$4 sm:$0xff]   ;;  %v4024_v0 = vld [vmem:[#allocation8 + $0x9a0] ss:$16 sps:$4 sm:$0xff]  }
 0x3e1   : > { %4078 = vtanh.f32 %v1857_v62  ;;  %v4029_v62 = vld [vmem:[#allocation8 + $0x9ac] ss:$16 sps:$4 sm:$0xff]  }
 0x3eb   : > { %v4079_v2 = vpop.eup %4078 }
 0x3ec   : > { %v1860_v3 = vmul.f32 %v4079_v2, %v1859_v1  ;;  %v4027_v1 = vld [vmem:[#allocation8 + $0x9a8] ss:$16 sps:$4 sm:$0xff]   ;;  %v4032_v2 = vld [vmem:[#allocation8 + $0x9c4] ss:$16 sps:$4 sm:$0xff]  }
 0x3ee   : > { %v1862_v5 = vadd.f32 %v1861_v4, %v1860_v3  ;;  %v4035_v3 = vld [vmem:[#allocation8 + $0x9cc] ss:$16 sps:$4 sm:$0xff]  }
 0x3ef   : > { %v4574_v4 = vld [vmem:[#allocation2 + $0x4] sm:$0x1] }
 0x3f0   : > { %1863 = vst [vmem:[#allocation2 + $0x2] sm:$0x1] %v1862_v5  ;;  %v1865_v8 = vpack.c.bf16 %v1862_v5, %v1862_v5  ;;  %v2379_v5 = vpack.c.bf16 %v4574_v4, %v4574_v4 }
 0x3f2   : > { %2308 = vmatmul.mubr.bf16.vlgmr.msra.gmra.mrb[12].mxu0 %v1865_v8  ;;  %2349 = vmatmul.mubr.bf16.vlgmr.msra.gmra.mrb[12].mxu1 %v1865_v8  ;;  %v4038_v8 = vld [vmem:[#allocation8 + $0x9e4] ss:$16 sps:$4 sm:$0xff]  }
 0x3f3   : > { %2789 = vmatpush1.bf16.msra.mxu0 %v3946_v6  ;;  %2830 = vmatpush1.bf16.msra.mxu1 %v3949_v7  ;;  %v4030_v6 = vld [vmem:[#allocation8 + $0x9c0] ss:$16 sps:$4 sm:$0xff]   ;;  %v4033_v7 = vld [vmem:[#allocation8 + $0x9c8] ss:$16 sps:$4 sm:$0xff]  }
 0x3f4   : > { %2790 = vmatprep.subr.bf16.mxu0 %v3954_v9  ;;  %2831 = vmatprep.subr.bf16.mxu1 %v3957_v10  ;;  %v4041_v9 = vld [vmem:[#allocation8 + $0x9ec] ss:$16 sps:$4 sm:$0xff]   ;;  %v4036_v10 = vld [vmem:[#allocation8 + $0x9e0] ss:$16 sps:$4 sm:$0xff]  }
 0x3f5   : > { %2820 = vmatprep.mubr.bf16.mxu0 %v2379_v5  ;;  %2861 = vmatprep.mubr.bf16.mxu1 %v2379_v5 }
 0x3f7   : > { %2791 = vmatpush1.bf16.msra.mxu0 %v3952_v12  ;;  %2832 = vmatpush1.bf16.msra.mxu1 %v3955_v14  ;;  %v4039_v12 = vld [vmem:[#allocation8 + $0x9e8] ss:$16 sps:$4 sm:$0xff]  }
 0x3f8   : > { %2792 = vmatprep.subr.bf16.mxu0 %v3960_v15  ;;  %2833 = vmatprep.subr.bf16.mxu1 %v3963_v16  ;;  %v1933_v14 = vld [vmem:[#allocation10 + $0x3] ss:$8 sm:$0xf] }
 0x3f9   : > { %v2258_v15 = vrot.slane %v1933_v14, %v4544_v11 }
 0x3fb   : > { %2793 = vmatpush1.bf16.msra.mxu0 %v3958_v46  ;;  %2834 = vmatpush1.bf16.msra.mxu1 %v3961_v17  ;;  %v2262_v17 = vrot.slane %v1933_v14, %v4546_v13 }
 0x3fc   : > { %2794 = vmatprep.subr.bf16.mxu0 %v3966_v18  ;;  %2835 = vmatprep.subr.bf16.mxu1 %v3969_v19 }
 0x3ff   : > { %2795 = vmatpush1.bf16.msra.mxu0 %v3964_v20  ;;  %2836 = vmatpush1.bf16.msra.mxu1 %v3967_v21 }
 0x400   : > { %2796 = vmatprep.subr.bf16.mxu0 %v3972_v22  ;;  %2837 = vmatprep.subr.bf16.mxu1 %v3975_v23 }
 0x403   : > { %2797 = vmatpush1.bf16.msra.mxu0 %v3970_v24  ;;  %2838 = vmatpush1.bf16.msra.mxu1 %v3973_v26 }
 0x404   : > { %2798 = vmatprep.subr.bf16.mxu0 %v3978_v27  ;;  %2839 = vmatprep.subr.bf16.mxu1 %v3981_v28 }
 0x407   : > { %2799 = vmatpush1.bf16.msra.mxu0 %v3976_v29  ;;  %2840 = vmatpush1.bf16.msra.mxu1 %v3979_v32 }
 0x408   : > { %2800 = vmatprep.subr.bf16.mxu0 %v3984_v33  ;;  %2841 = vmatprep.subr.bf16.mxu1 %v3987_v34  ;;  %v2270_v34 = vrot.slane %v1933_v14, %v4550_v30 }
 0x40b   : > { %2801 = vmatpush1.bf16.msra.mxu0 %v3982_v35  ;;  %2842 = vmatpush1.bf16.msra.mxu1 %v3985_v36  ;;  %v2266_v35 = vrot.slane %v1933_v14, %v4552_v31 }
 0x40c   : > { %2802 = vmatprep.subr.bf16.mxu0 %v3990_v37  ;;  %2843 = vmatprep.subr.bf16.mxu1 %v3993_v63 }
 0x40f   : > { %2803 = vmatpush1.bf16.msra.mxu0 %v3988_v38  ;;  %2844 = vmatpush1.bf16.msra.mxu1 %v3991_v39 }
 0x410   : > { %2804 = vmatprep.subr.bf16.mxu0 %v3996_v40  ;;  %2845 = vmatprep.subr.bf16.mxu1 %v3999_v41 }
 0x413   : > { %2805 = vmatpush1.bf16.msra.mxu0 %v3994_v42  ;;  %2846 = vmatpush1.bf16.msra.mxu1 %v3997_v43 }
 0x414   : > { %2806 = vmatprep.subr.bf16.mxu0 %v4002_v44  ;;  %2847 = vmatprep.subr.bf16.mxu1 %v4005_v45 }
 0x417   : > { %2807 = vmatpush1.bf16.msra.mxu0 %v4000_v47  ;;  %2848 = vmatpush1.bf16.msra.mxu1 %v4003_v48 }
 0x418   : > { %2808 = vmatprep.subr.bf16.mxu0 %v4008_v49  ;;  %2849 = vmatprep.subr.bf16.mxu1 %v4011_v50  ;;  %v4042_v49 = vld [vmem:[#allocation11] sm:$0xff]   ;;  %v4315_v50 = vmov 0.0  }
 0x41b   : > { %2809 = vmatpush1.bf16.msra.mxu0 %v4006_v51  ;;  %2850 = vmatpush1.bf16.msra.mxu1 %v4009_v52  ;;  %v4043_v51 = vld [vmem:[#allocation11 + $0x8] sm:$0xff]   ;;  %v4044_v52 = vld [vmem:[#allocation11 + $0x10] sm:$0xff]  }
 0x41c   : > { %2810 = vmatprep.subr.bf16.mxu0 %v4014_v53  ;;  %2851 = vmatprep.subr.bf16.mxu1 %v4017_v54  ;;  %v4045_v53 = vld [vmem:[#allocation11 + $0x18] sm:$0xff]   ;;  %v4047_v54 = vld [vmem:[#allocation11 + $0x28] sm:$0xff]  }
 0x41f   : > { %2811 = vmatpush1.bf16.msra.mxu0 %v4012_v55  ;;  %2852 = vmatpush1.bf16.msra.mxu1 %v4015_v56  ;;  %v4048_v55 = vld [vmem:[#allocation11 + $0x30] sm:$0xff]   ;;  %v4049_v56 = vld [vmem:[#allocation11 + $0x38] sm:$0xff]  }
 0x420   : > { %2812 = vmatprep.subr.bf16.mxu0 %v4020_v57  ;;  %2853 = vmatprep.subr.bf16.mxu1 %v4023_v58  ;;  %v2446_v57 = vld [vmem:[#allocation10 + $0x4] ss:$8 sm:$0xf] }
 0x421   : > { %v2771_v58 = vrot.slane %v2446_v57, %v4544_v11  ;;  %v2783_v14 = vrot.slane %v2446_v57, %v4550_v30 }
 0x423   : > { %2813 = vmatpush1.bf16.msra.mxu0 %v4018_v59  ;;  %2854 = vmatpush1.bf16.msra.mxu1 %v4021_v60 }
 0x424   : > { %2814 = vmatprep.subr.bf16.mxu0 %v4026_v61  ;;  %2855 = vmatprep.subr.bf16.mxu1 %v4029_v62  ;;  %v2775_v61 = vrot.slane %v2446_v57, %v4546_v13  ;;  %v2779_v13 = vrot.slane %v2446_v57, %v4552_v31  ;;  %v2907_v31 = vld [vmem:[#allocation13] sm:$0x1] }
 0x427   : > { %2815 = vmatpush1.bf16.msra.mxu0 %v4024_v0  ;;  %2856 = vmatpush1.bf16.msra.mxu1 %v4027_v1 }
 0x428   : > { %2816 = vmatprep.subr.bf16.mxu0 %v4032_v2  ;;  %2857 = vmatprep.subr.bf16.mxu1 %v4035_v3 }
 0x42b   : > { %2817 = vmatpush1.bf16.msra.mxu0 %v4030_v6  ;;  %2858 = vmatpush1.bf16.msra.mxu1 %v4033_v7 }
 0x42c   : > { %2818 = vmatprep.subr.bf16.mxu0 %v4038_v8  ;;  %2859 = vmatprep.subr.bf16.mxu1 %v4041_v9 }
 0x42f   : > { %2819 = vmatpush1.bf16.msra.mxu0 %v4036_v10  ;;  %2860 = vmatpush1.bf16.msra.mxu1 %v4039_v12 }
 0x430   : > { %3467 = vmatprep.subr.bf16.mxu0 %v4315_v50 }
 0x4c5   : > { %v2309_v16 = vpop.f32.mrb[12].mxu0  ;;  %v2350_v46 = vpop.f32.mrb[12].mxu1 }
 0x4c6   : > { %v2310_v18 = vadd.f32 %v2309_v16, %v2258_v15  ;;  %v2311_v19 = vpop.f32.mrb[13].mxu0  ;;  %v2352_v20 = vpop.f32.mrb[13].mxu1  ;;  %v2351_v38 = vadd.f32 %v2350_v46, %v2266_v35 }
 0x4c7   : > { %v2313_v21 = vpop.f32.mrb[14].mxu0  ;;  %v2354_v22 = vpop.f32.mrb[14].mxu1  ;;  %v2312_v27 = vadd.f32 %v2311_v19, %v2262_v17  ;;  %v2353_v37 = vadd.f32 %v2352_v20, %v2270_v34 }
 0x4c8   : > { %v3373_v23 = vmul.f32 -1.442695, %v2310_v18  ;;  %v2314_v24 = vpop.f32.mrb[15].mxu0  ;;  %v2355_v26 = vpop.f32.mrb[15].mxu1 }
 0x4c9   : > { %v3374_v28 = vmul.f32 -1.442695, %v2312_v27 }
 0x4ca   : > { %4080 = vpow2.f32 %v3373_v23 }
 0x4cb   : > { %4082 = vpow2.f32 %v3374_v28 }
 0x4d4   : > { %v4081_v29 = vpop.eup %4080 }
 0x4d5   : > { %v2360_v32 = vadd.f32 1.0, %v4081_v29  ;;  %v4083_v33 = vpop.eup %4082 }
 0x4d6   : > { %v2366_v36 = vadd.f32 1.0, %v4083_v33 }
 0x4d7   : > { %4084 = vrcp.f32 %v2360_v32 }
 0x4d8   : > { %4086 = vrcp.f32 %v2366_v36 }
 0x4e1   : > { %v4085_v63 = vpop.eup %4084 }
 0x4e2   : > { %v2369_v39 = vmul.f32 %v4085_v63, %v2353_v37  ;;  %v4087_v41 = vpop.eup %4086 }
 0x4e3   : > { %v2372_v42 = vsub.f32 1.0, %v4087_v41  ;;  %v2374_v45 = vmul.f32 %v4087_v41, %v4565_v25  ;;  %v4046_v25 = vld [vmem:[#allocation11 + $0x20] sm:$0xff]  }
 0x4e4   : > { %v2370_v40 = vadd.f32 %v2369_v39, %v2351_v38 }
 0x4e6   : > { %4088 = vtanh.f32 %v2370_v40 }
 0x4f0   : > { %v4089_v43 = vpop.eup %4088 }
 0x4f1   : > { %v2373_v44 = vmul.f32 %v4089_v43, %v2372_v42 }
 0x4f3   : > { %v2375_v47 = vadd.f32 %v2374_v45, %v2373_v44 }
 0x4f5   : > { %2376 = vst [vmem:[#allocation2 + $0x3] sm:$0x1] %v2375_v47  ;;  %v2378_v48 = vpack.c.bf16 %v2375_v47, %v2375_v47 }
 0x4f7   : > { %2821 = vmatmul.mubr.bf16.vlgmr.msra.gmra.mrb[16].mxu0 %v2378_v48  ;;  %2862 = vmatmul.mubr.bf16.vlgmr.msra.gmra.mrb[16].mxu1 %v2378_v48 }
 0x4f8   : > { %3468 = vmatpush3.bf16.msra.mxu0 %v4042_v49  ;;  %3483 = vmatprep.mubr.msk.bf16.mxu0 %vm4316_vm0, %v4315_v50 }
 0x4f9   : > { %3469 = vmatprep.subr.bf16.mxu0 %v4315_v50 }
 0x4fc   : > { %3470 = vmatpush3.bf16.msra.mxu0 %v4043_v51 }
 0x4fd   : > { %3471 = vmatprep.subr.bf16.mxu0 %v4315_v50 }
 0x500   : > { %3472 = vmatpush3.bf16.msra.mxu0 %v4044_v52 }
 0x501   : > { %3473 = vmatprep.subr.bf16.mxu0 %v4315_v50 }
 0x504   : > { %3474 = vmatpush3.bf16.msra.mxu0 %v4045_v53 }
 0x505   : > { %3475 = vmatprep.subr.bf16.mxu0 %v4315_v50 }
 0x508   : > { %3476 = vmatpush3.bf16.msra.mxu0 %v4046_v25 }
 0x509   : > { %3477 = vmatprep.subr.bf16.mxu0 %v4315_v50 }
 0x50c   : > { %3478 = vmatpush3.bf16.msra.mxu0 %v4047_v54 }
 0x50d   : > { %3479 = vmatprep.subr.bf16.mxu0 %v4315_v50 }
 0x510   : > { %3480 = vmatpush3.bf16.msra.mxu0 %v4048_v55 }
 0x511   : > { %3481 = vmatprep.subr.bf16.mxu0 %v4315_v50 }
 0x514   : > { %3482 = vmatpush3.bf16.msra.mxu0 %v4049_v56 }
 0x5ca   : > { %v2822_v59 = vpop.f32.mrb[16].mxu0  ;;  %v2863_v60 = vpop.f32.mrb[16].mxu1 }
 0x5cb   : > { %v2823_v62 = vadd.f32 %v2822_v59, %v2771_v58  ;;  %v2824_v0 = vpop.f32.mrb[17].mxu0  ;;  %v2865_v1 = vpop.f32.mrb[17].mxu1  ;;  %v2864_v17 = vadd.f32 %v2863_v60, %v2779_v13 }
 0x5cc   : > { %v2826_v2 = vpop.f32.mrb[18].mxu0  ;;  %v2867_v3 = vpop.f32.mrb[18].mxu1  ;;  %v2825_v8 = vadd.f32 %v2824_v0, %v2775_v61  ;;  %v2866_v16 = vadd.f32 %v2865_v1, %v2783_v14 }
 0x5cd   : > { %v3439_v5 = vmul.f32 -1.442695, %v2823_v62  ;;  %v2827_v6 = vpop.f32.mrb[19].mxu0  ;;  %v2868_v7 = vpop.f32.mrb[19].mxu1 }
 0x5ce   : > { %v3440_v9 = vmul.f32 -1.442695, %v2825_v8 }
 0x5cf   : > { %4090 = vpow2.f32 %v3439_v5 }
 0x5d0   : > { %4092 = vpow2.f32 %v3440_v9 }
 0x5d9   : > { %v4091_v10 = vpop.eup %4090 }
 0x5da   : > { %v2873_v12 = vadd.f32 1.0, %v4091_v10  ;;  %v4093_v11 = vpop.eup %4092 }
 0x5db   : > { %v2879_v15 = vadd.f32 1.0, %v4093_v11 }
 0x5dc   : > { %4094 = vrcp.f32 %v2873_v12 }
 0x5dd   : > { %4096 = vrcp.f32 %v2879_v15 }
 0x5e6   : > { %v4095_v46 = vpop.eup %4094 }
 0x5e7   : > { %v2882_v18 = vmul.f32 %v4095_v46, %v2866_v16  ;;  %v4097_v20 = vpop.eup %4096 }
 0x5e8   : > { %v2885_v21 = vsub.f32 1.0, %v4097_v20  ;;  %v2887_v24 = vmul.f32 %v4097_v20, %v4574_v4 }
 0x5e9   : > { %v2883_v19 = vadd.f32 %v2882_v18, %v2864_v17 }
 0x5eb   : > { %4098 = vtanh.f32 %v2883_v19 }
 0x5f5   : > { %v4099_v22 = vpop.eup %4098 }
 0x5f6   : > { %v2886_v23 = vmul.f32 %v4099_v22, %v2885_v21 }
 0x5f8   : > { %v2888_v26 = vadd.f32 %v2887_v24, %v2886_v23 }
 0x5fa   : > { %2889 = vst [vmem:[#allocation2 + $0x4] sm:$0x1] %v2888_v26  ;;  %v2890_v30 = vpack.c.bf16 %v2888_v26, %v2888_v26 }
 0x5fc   : > { %3484 = vmatmul.mubr.bf16.vlgmr.msra.gmra.mrb[20].mxu0 %v2890_v30 }
 0x601   : > { %v3003_v35 = vld [vmem:[#allocation2] sm:$0x1f] (!%p3450_p4) }
 0x602   : > { %3004 = vst [vmem:[%s4627_s8] sm:$0x1f] (!%p3450_p4), %v3003_v35 }
 0x6ce   : > { %3002 = sbr.rel (%p3450_p4) target bundleno = 1749 (0x6d5), region = 72 }
 0x6cf   : > { %v2990_v27 = vpop.f32.mrb[20].mxu0 }
 0x6d0   : > { %v2991_v28 = vadd.f32 %v2990_v27, %v2907_v31  ;;  %v3485_v29 = vpop.f32.mrb[21].mxu0 }
 0x6d1   : > { %v2993_v32 = vpop.f32.mrb[22].mxu0 }
 0x6d2   : > { %v2996_v33 = vmax.f32 %v2991_v28, 0.0  ;;  %v3486_v34 = vpop.f32.mrb[23].mxu0 }
 0x6d4   : > { %3457 = vst [vmem:[%s3455_s14 - $0x1] sm:$0x1] %v2996_v33 }
 0x6d5 PF: > { %p3537_p8 = scmp.eq.s32.totalorder %s4381_s0, 7  ;;  %s4317_s19 = smov [#allocation14]  }
 0x6d6   : > { %s3012_s22 = sshll.u32 %s4317_s19, 4  ;;  %s3013_s22 = int_to_ptr.vmem [resolvable:$true] %s3012_s22 }
 0x6d7   : > { %s4251_s24 = scalar_lea.vmem %s3013_s22, 128  ;;  %p4258_p13 = scmp.lt.s32.totalorder %s3013_s22, %s3013_s22 }
 0x6d8   : > { %p4252_p10 = scmp.ne.s32.totalorder %s3013_s22, %s4251_s24  ;;  %p4259_p6 = scmp.lt.s32.totalorder %s4251_s24, %s4251_s24 }
 0x6da   : > { %p4253_p12 = pnand %p4252_p10, %p3537_p8  ;;  %p4260_p11 = por %p4259_p6, %p4258_p13 }
 0x6dc   : > { %p4254_p5 = pneg %p4253_p12 }
 0x6de   : > { %p4261_p7 = pnand %p4260_p11, %p4254_p5 }
 0x6e0   : > { %4264 = shalt.err (!%p4261_p7)
}
 0x6e1   : > { %s4265_s26 = scalar_lea.hbm %s4626_s7, 128 }
 0x6e2   : > { %p4266_p0 = scmp.ne.s32.totalorder %s4626_s7, %s4265_s26  ;;  %p4271_p9 = scmp.lt.u32.totalorder %s4265_s26, %s4626_s7 }
 0x6e4   : > { %p4267_p1 = pnand %p4266_p0, %p3537_p8 }
 0x6e6   : > { %p4268_p2 = pneg %p4267_p1 }
 0x6e8   : > { %p4273_p3 = pnand %p4271_p9, %p4268_p2 }
 0x6ea   : > { %4276 = shalt.err (!%p4273_p3)
}
 0x6eb   : > { %3508 = dma.vmem_to_hbm [thread:$0]  (%p3537_p8), %s3013_s22, 128, %s4626_s7, [#allocation7]  }
 0x6ec   : > { %4296 = dma.done.wait (%p3537_p8), [#allocation7], 128  }
 0x6ed   : > { %4298 = vsyncadd (%p3537_p8), [#allocation7], 4294967168 }
 0x6ee PF: > { %s27_s15 = sadd.s32 1, %s4301_s15  }
 0x6ef   : > { %p24_p4 = scmp.ge.s32.totalorder %s27_s15, 10  }
 0x6f1   :  { %26 = sbr.rel (!%p24_p4) target bundleno = 16 (0x10), region = 115 }
 0x6f8   :  { %3031 = vsyncpa [#allocation6], 1 }
 0x6f9   :  { %3033 = vsyncpa [#allocation6 + $0x1], 1 }
 0x6fa   :  { %3034 = vsyncpa [#allocation9], 1 }
 0x6fb   :  { %3035 = vsyncpa [#allocation12], 1 }
 0x6fc   :  { %3036 = vsyncpa [#allocation7], 1 }
 0x6fd   :  { %3038 = vsyncpa [#allocation7 + $0x1], 1 }

</bundles_post_ra>
